<compile_context>
chip_gen: v5e
topology: v5e:2x2
jax: 0.10.0
libtpu: 0.0.40
codegen_flags: <defaults>
</compile_context>

<pallas_src>
import numpy as np
import jax
import jax.numpy as jnp
from jax import lax
from jax.experimental import pallas as pl
from jax.experimental.pallas import tpu as pltpu

# ------------------------- configuration (small) -----------------------------
FILTER_SZ = 2
N_LC_IN = 8
N_LC_OUT = 8
LC_UPSAMPLE_FILT_SIZES = (4, 4)
LC_UPSAMPLE_STRIDES = (2, 2)
N_RES = 16
N_DIL = 16
N_SKP = 16
N_POST = 16
N_QUANT = 16
N_BLOCKS = 2
N_BLOCK_LAYERS = 2
JITTER_PROB = 0.1
N_SPEAKERS = 4
N_GLOBAL_EMBED = 8

B = 2
T_LC = 12                                   # sparse local-conditioning steps

DILATIONS = tuple(2 ** bl for _ in range(N_BLOCKS) for bl in range(N_BLOCK_LAYERS))
N_LAYERS = len(DILATIONS)
TOTAL_WING = sum((FILTER_SZ - 1) * d for d in DILATIONS)
N_COND = N_LC_OUT + N_GLOBAL_EMBED


def _upsampled_len(t_lc):
    t = t_lc - 2                            # lc_conv, kernel 3, valid
    for f, s in zip(LC_UPSAMPLE_FILT_SIZES, LC_UPSAMPLE_STRIDES):
        t = (t + 1) * s - f                 # ConvTranspose1d, padding=f-s
    return t


T_WAV = _upsampled_len(T_LC)                # T1 (wav timesteps)
T_OUT = T_WAV - TOTAL_WING                  # N  (output timesteps)

R_ROWS = B * T_WAV                          # batch folded onto sublanes
R_PAD = ((R_ROWS + 7) // 8) * 8             # sublane-aligned row count
OUT_LANES = 128                             # lane-dense output slab width
FG = 2 * N_DIL                              # filt|gate fused width


# ------------------------------ Pallas kernel --------------------------------
def wavenet_core_kernel(wav_ref, cond_ref,
                        wb_ref, bb_ref,
                        wtap_ref, wcond_ref, bfg_ref, wrs_ref,
                        wp1_ref, bp1_ref, wp2_ref, bp2_ref,
                        out_ref, shift_ref):
    f32, bf16 = jnp.float32, jnp.bfloat16
    wav = wav_ref[...]                       # (R_PAD, Q)     bf16
    cond = cond_ref[...]                     # (R_PAD, COND)  bf16

    # base 1x1 conv (bf16 operands, f32 accumulate)
    x = jnp.dot(wav, wb_ref[...], preferred_element_type=f32) + bb_ref[...]

    # conditioning projections + filt/gate biases for ALL layers in one pass:
    # (R_PAD, N_LAYERS * FG)
    cond_proj = (jnp.dot(cond, wcond_ref[...], preferred_element_type=f32)
                 + bfg_ref[...])

    skp_sum = jnp.zeros((R_PAD, N_SKP), f32)
    # rows [0, dil) of the shifted lo-tap stay zero/stale; those rows are
    # outside the layer's valid receptive field and never reach valid output
    # rows (they are cut by the wrapper along with the wing).
    shift_ref[...] = jnp.zeros((R_PAD, FG), f32)

    for i, d in enumerate(DILATIONS):        # static unroll (N_LAYERS = 4)
        # one dot -> lo/hi tap projections for both filt & gate: (R_PAD, 4*N_DIL)
        proj = jnp.dot(x.astype(bf16), wtap_ref[i], preferred_element_type=f32)
        # row-shift of the lo projection by the dilation: lo[p] = proj_lo[p - d]
        shift_ref[pl.ds(d, R_PAD - d), :] = proj[:R_PAD - d, :FG]
        fg = shift_ref[...] + proj[:, FG:] + cond_proj[:, i * FG:(i + 1) * FG]
        z = jnp.tanh(fg[:, :N_DIL]) * jax.nn.sigmoid(fg[:, N_DIL:])
        # fused residual/skip 1x1 convs: (R_PAD, N_RES + N_SKP)
        rs = jnp.dot(z.astype(bf16), wrs_ref[i], preferred_element_type=f32)
        x = rs[:, :N_RES] + x
        skp_sum = skp_sum + rs[:, N_RES:]

    post1 = jnp.dot(jnp.maximum(skp_sum, 0.0).astype(bf16), wp1_ref[...],
                    preferred_element_type=f32) + bp1_ref[...]
    quant = jnp.dot(jnp.maximum(post1, 0.0).astype(bf16), wp2_ref[...],
                    preferred_element_type=f32) + bp2_ref[...]
    out_ref[...] = quant                     # (R_PAD, 128) lane-dense store


def fuse_params(p):
    """Pre-concatenate / cast the per-layer weights into the fused kernel operands."""
    bf = jnp.bfloat16
    # dilated taps for filt|gate:  columns [ws0|wg0|ws1|wg1]  -> (L, N_RES, 4*N_DIL)
    w_tap = jnp.concatenate([p['ws0'], p['wg0'], p['ws1'], p['wg1']], axis=-1)
    # conditioning proj for all layers:  (N_COND, L*2*N_DIL) = (16, 128)
    w_cond = jnp.concatenate([p['wps'], p['wpg']], axis=-1)          # (L, C, 2D)
    w_cond = jnp.transpose(w_cond, (1, 0, 2)).reshape(N_COND, N_LAYERS * FG)
    # filt/gate biases for all layers, matching w_cond column order: (1, L*2*N_DIL)
    b_fg = jnp.concatenate([p['bs'], p['bg']], axis=-1)              # (L, 1, 2D)
    b_fg = b_fg.reshape(1, N_LAYERS * FG)                            # f32
    # residual | skip
    w_rs = jnp.concatenate([p['wres'], p['wskp']], axis=-1)          # (L, D, R+S)
    # pad post2 to 128 output lanes for a lane-dense final store
    w_post2 = jnp.zeros((N_POST, OUT_LANES), jnp.float32).at[:, :N_QUANT].set(p['w_post2'])
    b_post2 = jnp.zeros((1, OUT_LANES), jnp.float32).at[:, :N_QUANT].set(p['b_post2'])
    return dict(
        w_base=p['w_base'].astype(bf), b_base=p['b_base'],
        w_tap=w_tap.astype(bf), w_cond=w_cond.astype(bf), b_fg=b_fg,
        w_rs=w_rs.astype(bf),
        w_post1=p['w_post1'].astype(bf), b_post1=p['b_post1'],
        w_post2=w_post2.astype(bf), b_post2=b_post2)


def _zero_map(ndim):
    return lambda i, _n=ndim: (0,) * _n


def _cost_estimate(args):
    mm = (N_QUANT * N_RES
          + N_COND * N_LAYERS * FG
          + N_LAYERS * (N_RES * 4 * N_DIL + N_DIL * (N_RES + N_SKP))
          + N_SKP * N_POST + N_POST * OUT_LANES)
    flops = 2 * R_PAD * mm
    transcendentals = 2 * R_PAD * N_LAYERS * N_DIL
    bytes_accessed = int(sum(int(np.prod(a.shape)) * a.dtype.itemsize for a in args)
                         + R_PAD * OUT_LANES * 4)
    return pl.CostEstimate(flops=int(flops), transcendentals=int(transcendentals),
                           bytes_accessed=bytes_accessed)


def wavenet_core(wav_tc, cond_tc, p):
    """wav_tc: (B, T_WAV, N_QUANT), cond_tc: (B, T_WAV, N_COND) -> (B, T_OUT, N_QUANT)"""
    f = fuse_params(p)
    wav_flat = wav_tc.reshape(R_ROWS, N_QUANT)
    cond_flat = cond_tc.reshape(R_ROWS, N_COND)
    pad = R_PAD - R_ROWS
    if pad:
        wav_flat = jnp.pad(wav_flat, ((0, pad), (0, 0)))
        cond_flat = jnp.pad(cond_flat, ((0, pad), (0, 0)))
    wav_flat = wav_flat.astype(jnp.bfloat16)
    cond_flat = cond_flat.astype(jnp.bfloat16)

    args = (wav_flat, cond_flat,
            f['w_base'], f['b_base'],
            f['w_tap'], f['w_cond'], f['b_fg'], f['w_rs'],
            f['w_post1'], f['b_post1'], f['w_post2'], f['b_post2'])
    in_specs = [pl.BlockSpec(a.shape, _zero_map(a.ndim)) for a in args]

    out_full = pl.pallas_call(
        wavenet_core_kernel,
        out_shape=jax.ShapeDtypeStruct((R_PAD, OUT_LANES), jnp.float32),
        grid=(1,),                               # batch folded onto sublanes
        in_specs=in_specs,
        out_specs=pl.BlockSpec((R_PAD, OUT_LANES), lambda i: (0, 0)),
        scratch_shapes=[pltpu.VMEM((R_PAD, FG), jnp.float32)],
        compiler_params=pltpu.CompilerParams(dimension_semantics=("arbitrary",)),
        cost_estimate=_cost_estimate(args),
    )(*args)

    out = out_full[:R_ROWS, :N_QUANT].reshape(B, T_WAV, N_QUANT)
    return out[:, TOTAL_WING:, :]                # (B, T_OUT, N_QUANT)


# ------------------------------ glue (plain JAX) ------------------------------
def jitter_index(n_batch, n_time, prob, seed=0):
    # TODO(synk): Jitter uses torch.distributions Markov-chain sampling; here the
    # same chain is sampled with a fixed-seed numpy RNG (deterministic in-script).
    rng = np.random.RandomState(seed)
    s = 1.0 - 2.0 * prob
    tmp = np.tile(np.array([prob, s, prob], dtype=np.float64), (3, 3, 1))
    tmp[2][1] = np.array([0.0, s / (prob + s), prob / (prob + s)])
    mindex = np.zeros((n_batch, n_time + 1), dtype=np.int64)
    mindex[:, 0:2] = 1
    for b in range(n_batch):
        for t in range(2, n_time):
            probs = tmp[mindex[b, t - 1], mindex[b, t - 2]]
            mindex[b, t] = rng.choice(3, p=probs)
        mindex[b, n_time] = 1
    mindex = mindex + (np.arange(n_time + 1, dtype=np.int64) - 2)[None, :]
    return jnp.asarray(mindex[:, 1:])       # (B, T) time-gather indices


def prepare_core_inputs(wav_onehot, lc_sparse, speaker_inds, p):
    # jitter
    idx = jitter_index(lc_sparse.shape[0], lc_sparse.shape[2], JITTER_PROB, seed=0)
    lc = jnp.take_along_axis(lc_sparse, idx[:, None, :], axis=2)

    dn = ('NCH', 'OIH', 'NCH')
    # lc_conv: Conv1d(N_LC_IN, N_LC_OUT, 3, bias)
    lc = lax.conv_general_dilated(lc, p['w_lc'], (1,), 'VALID',
                                  dimension_numbers=dn) + p['b_lc'][None, :, None]
    # lc_upsample: ConvTranspose1d(f, stride, padding=f-stride) chain
    for w_pt, b, f, st in zip(p['w_up'], p['b_up'],
                              LC_UPSAMPLE_FILT_SIZES, LC_UPSAMPLE_STRIDES):
        w = jnp.flip(jnp.transpose(w_pt, (1, 0, 2)), axis=2)   # (O, I, K), flipped
        lc = lax.conv_general_dilated(lc, w, window_strides=(1,),
                                      padding=[(st - 1, st - 1)],
                                      lhs_dilation=(st,),
                                      dimension_numbers=dn) + b[None, :, None]
    # Conditioning: one-hot speaker -> linear embed, broadcast over time, concat
    one_hot = jnp.eye(N_SPEAKERS, dtype=jnp.float32)[speaker_inds]       # (B, S)
    gc = one_hot @ p['w_emb'].T + p['b_emb']                             # (B, G)
    gc_rep = jnp.broadcast_to(gc[:, :, None], (B, N_GLOBAL_EMBED, lc.shape[2]))
    cond = jnp.concatenate([lc, gc_rep], axis=1)                         # (B, C, T1)

    wav_tc = jnp.transpose(wav_onehot, (0, 2, 1)).astype(jnp.float32)
    cond_tc = jnp.transpose(cond, (0, 2, 1)).astype(jnp.float32)
    return wav_tc, cond_tc


def wavenet_forward(wav_onehot, lc_sparse, speaker_inds, p):
    wav_tc, cond_tc = prepare_core_inputs(wav_onehot, lc_sparse, speaker_inds, p)
    quant_tc = wavenet_core(wav_tc, cond_tc, p)                          # (B, N, Q)
    return jnp.transpose(quant_tc, (0, 2, 1))                            # (B, Q, N)


# ------------------------ reference (plain jnp) for the core ------------------
def core_ref(wav_tc, cond_tc, p):
    """Mirrors the PyTorch math; matmul operands are cast to bf16 exactly as in the
    kernel (f32 accumulation, f32 biases / element-wise math)."""
    bf = jnp.bfloat16

    def dot(a, b):
        return jnp.dot(a.astype(bf), b.astype(bf), preferred_element_type=jnp.float32)

    def one(wav, cond):
        x = dot(wav, p['w_base']) + p['b_base']
        skp_sum = jnp.zeros((T_OUT, N_SKP), jnp.float32)
        cum = 0
        for i, d in enumerate(DILATIONS):
            L = T_WAV - cum
            cond_lead = cum + d
            skip_lead = TOTAL_WING - cond_lead
            x_lo, x_hi, c = x[:L - d], x[d:L], cond[cond_lead:]
            filt = dot(x_lo, p['ws0'][i]) + dot(x_hi, p['ws1'][i]) + dot(c, p['wps'][i]) + p['bs'][i]
            gate = dot(x_lo, p['wg0'][i]) + dot(x_hi, p['wg1'][i]) + dot(c, p['wpg'][i]) + p['bg'][i]
            z = jnp.tanh(filt) * jax.nn.sigmoid(gate)
            x = dot(z, p['wres'][i]) + x_hi
            skp_sum = skp_sum + dot(z[skip_lead:], p['wskp'][i])
            cum += d
        post1 = dot(jnp.maximum(skp_sum, 0.0), p['w_post1']) + p['b_post1']
        return dot(jnp.maximum(post1, 0.0), p['w_post2']) + p['b_post2']
    return jax.vmap(one)(wav_tc, cond_tc)


# ------------------------------ parameter init --------------------------------
def init_params(key):
    keys = iter(jax.random.split(key, 32))

    def nrm(shape, scale=0.1):
        return scale * jax.random.normal(next(keys), shape, jnp.float32)

    p = {}
    # lc_conv: Conv1d(N_LC_IN, N_LC_OUT, 3), PyTorch layout (O, I, K)
    p['w_lc'] = nrm((N_LC_OUT, N_LC_IN, 3))
    p['b_lc'] = nrm((N_LC_OUT,))
    # upsampling transposed convs, PyTorch layout (I, O, K), with bias
    p['w_up'] = [nrm((N_LC_OUT, N_LC_OUT, f)) for f in LC_UPSAMPLE_FILT_SIZES]
    p['b_up'] = [nrm((N_LC_OUT,)) for _ in LC_UPSAMPLE_FILT_SIZES]
    # Conditioning.speaker_embedding: Linear(N_SPEAKERS, N_GLOBAL_EMBED)
    p['w_emb'] = nrm((N_GLOBAL_EMBED, N_SPEAKERS))
    p['b_emb'] = nrm((N_GLOBAL_EMBED,))
    # base_layer 1x1 conv, stored as (in, out) matmul weight
    p['w_base'] = nrm((N_QUANT, N_RES))
    p['b_base'] = nrm((1, N_RES))
    # GRCC stack, stacked over layers; dilated filter taps stored as (in, out)
    p['ws0'] = nrm((N_LAYERS, N_RES, N_DIL))
    p['ws1'] = nrm((N_LAYERS, N_RES, N_DIL))
    p['wg0'] = nrm((N_LAYERS, N_RES, N_DIL))
    p['wg1'] = nrm((N_LAYERS, N_RES, N_DIL))
    p['bs'] = nrm((N_LAYERS, 1, N_DIL))
    p['bg'] = nrm((N_LAYERS, 1, N_DIL))
    p['wps'] = nrm((N_LAYERS, N_COND, N_DIL))
    p['wpg'] = nrm((N_LAYERS, N_COND, N_DIL))
    p['wres'] = nrm((N_LAYERS, N_DIL, N_RES))
    p['wskp'] = nrm((N_LAYERS, N_DIL, N_SKP))
    # post layers (1x1 convs)
    p['w_post1'] = nrm((N_SKP, N_POST))
    p['b_post1'] = nrm((1, N_POST))
    p['w_post2'] = nrm((N_POST, N_QUANT))
    p['b_post2'] = nrm((1, N_QUANT))
    return p


# ----------------------------------- main -------------------------------------
if __name__ == "__main__":
    key = jax.random.PRNGKey(0)
    kp, kw, kl, ks = jax.random.split(key, 4)
    params = init_params(kp)

    # inputs: wav_onehot (B, Q, T1), lc_sparse (B, L, T2), speaker_inds (B,)
    q_ids = jax.random.randint(kw, (B, T_WAV), 0, N_QUANT)
    wav_onehot = jnp.transpose(jax.nn.one_hot(q_ids, N_QUANT, dtype=jnp.float32),
                               (0, 2, 1))
    lc_sparse = jax.random.normal(kl, (B, N_LC_IN, T_LC), jnp.float32)
    speaker_inds = jax.random.randint(ks, (B,), 0, N_SPEAKERS)

    wav_tc, cond_tc = prepare_core_inputs(wav_onehot, lc_sparse, speaker_inds, params)
    out_kernel = jax.block_until_ready(wavenet_core(wav_tc, cond_tc, params))
    out_ref = jax.block_until_ready(core_ref(wav_tc, cond_tc, params))
    # Tolerance accounts only for tanh/sigmoid implementation differences and
    # summation-order effects (both sides use bf16 matmul operands, f32 accumulate).
    np.testing.assert_allclose(np.asarray(out_kernel), np.asarray(out_ref),
                               rtol=1e-3, atol=1e-4)

    quant = jax.block_until_ready(wavenet_forward(wav_onehot, lc_sparse,
                                                  speaker_inds, params))
    assert quant.shape == (B, N_QUANT, T_OUT), quant.shape
    assert bool(jnp.all(jnp.isfinite(quant)))
    print("KERNEL_OK")
</pallas_src>

<mosaic_0001>
module attributes {stable_mosaic.version = 11 : i64} {
  func.func @wavenet_core_kernel(%arg0: i32, %arg1: memref<72x16xbf16, #tpu.memory_space<vmem>>, %arg2: memref<72x16xbf16, #tpu.memory_space<vmem>>, %arg3: memref<16x16xbf16, #tpu.memory_space<vmem>>, %arg4: memref<1x16xf32, #tpu.memory_space<vmem>>, %arg5: memref<4x16x64xbf16, #tpu.memory_space<vmem>>, %arg6: memref<16x128xbf16, #tpu.memory_space<vmem>>, %arg7: memref<1x128xf32, #tpu.memory_space<vmem>>, %arg8: memref<4x16x32xbf16, #tpu.memory_space<vmem>>, %arg9: memref<16x16xbf16, #tpu.memory_space<vmem>>, %arg10: memref<1x16xf32, #tpu.memory_space<vmem>>, %arg11: memref<16x128xbf16, #tpu.memory_space<vmem>>, %arg12: memref<1x128xf32, #tpu.memory_space<vmem>>, %arg13: memref<72x128xf32, #tpu.memory_space<vmem>>, %arg14: memref<72x32xf32, #tpu.memory_space<vmem>>) attributes {dimension_semantics = [#tpu.dimension_semantics<arbitrary>], iteration_bounds = array<i64: 1>, scalar_prefetch = 0 : i64, scratch_operands = 1 : i64, tpu.core_type = #tpu.core_type<tc>, window_params = [{pipeline_mode = #tpu.pipeline_mode<synchronous>, transform_indices = @transform_0, window_bounds = array<i64: 72, 16>}, {pipeline_mode = #tpu.pipeline_mode<synchronous>, transform_indices = @transform_1, window_bounds = array<i64: 72, 16>}, {pipeline_mode = #tpu.pipeline_mode<synchronous>, transform_indices = @transform_2, window_bounds = array<i64: 16, 16>}, {pipeline_mode = #tpu.pipeline_mode<synchronous>, transform_indices = @transform_3, window_bounds = array<i64: 1, 16>}, {pipeline_mode = #tpu.pipeline_mode<synchronous>, transform_indices = @transform_4, window_bounds = array<i64: 4, 16, 64>}, {pipeline_mode = #tpu.pipeline_mode<synchronous>, transform_indices = @transform_5, window_bounds = array<i64: 16, 128>}, {pipeline_mode = #tpu.pipeline_mode<synchronous>, transform_indices = @transform_6, window_bounds = array<i64: 1, 128>}, {pipeline_mode = #tpu.pipeline_mode<synchronous>, transform_indices = @transform_7, window_bounds = array<i64: 4, 16, 32>}, {pipeline_mode = #tpu.pipeline_mode<synchronous>, transform_indices = @transform_8, window_bounds = array<i64: 16, 16>}, {pipeline_mode = #tpu.pipeline_mode<synchronous>, transform_indices = @transform_9, window_bounds = array<i64: 1, 16>}, {pipeline_mode = #tpu.pipeline_mode<synchronous>, transform_indices = @transform_10, window_bounds = array<i64: 16, 128>}, {pipeline_mode = #tpu.pipeline_mode<synchronous>, transform_indices = @transform_11, window_bounds = array<i64: 1, 128>}, {pipeline_mode = #tpu.pipeline_mode<synchronous>, transform_indices = @transform_12, window_bounds = array<i64: 72, 128>}]} {
    %c0 = arith.constant 0 : index
    %c0_0 = arith.constant 0 : index
    %0 = vector.load %arg1[%c0, %c0_0] : memref<72x16xbf16, #tpu.memory_space<vmem>>, vector<72x16xbf16>
    %c0_1 = arith.constant 0 : index
    %c0_2 = arith.constant 0 : index
    %1 = vector.load %arg2[%c0_1, %c0_2] : memref<72x16xbf16, #tpu.memory_space<vmem>>, vector<72x16xbf16>
    %c0_3 = arith.constant 0 : index
    %c0_4 = arith.constant 0 : index
    %2 = vector.load %arg3[%c0_3, %c0_4] : memref<16x16xbf16, #tpu.memory_space<vmem>>, vector<16x16xbf16>
    %cst = arith.constant dense<0.000000e+00> : vector<72x16xf32>
    %3 = tpu.matmul %0, %2, %cst {dimension_numbers = #tpu.dot_dimension_numbers<[1], [0], [0], [1], [0, 0, 1, 1], [], []>} : vector<72x16xbf16>, vector<16x16xbf16>, vector<72x16xf32> -> vector<72x16xf32>
    %c0_5 = arith.constant 0 : index
    %c0_6 = arith.constant 0 : index
    %4 = vector.load %arg4[%c0_5, %c0_6] : memref<1x16xf32, #tpu.memory_space<vmem>>, vector<1x16xf32>
    %5 = vector.broadcast %4 : vector<1x16xf32> to vector<72x16xf32>
    %6 = arith.addf %3, %5 : vector<72x16xf32>
    %c0_7 = arith.constant 0 : index
    %c0_8 = arith.constant 0 : index
    %7 = vector.load %arg6[%c0_7, %c0_8] : memref<16x128xbf16, #tpu.memory_space<vmem>>, vector<16x128xbf16>
    %cst_9 = arith.constant dense<0.000000e+00> : vector<72x128xf32>
    %8 = tpu.matmul %1, %7, %cst_9 {dimension_numbers = #tpu.dot_dimension_numbers<[1], [0], [0], [1], [0, 0, 1, 1], [], []>} : vector<72x16xbf16>, vector<16x128xbf16>, vector<72x128xf32> -> vector<72x128xf32>
    %c0_10 = arith.constant 0 : index
    %c0_11 = arith.constant 0 : index
    %9 = vector.load %arg7[%c0_10, %c0_11] : memref<1x128xf32, #tpu.memory_space<vmem>>, vector<1x128xf32>
    %10 = vector.broadcast %9 : vector<1x128xf32> to vector<72x128xf32>
    %11 = arith.addf %8, %10 : vector<72x128xf32>
    %cst_12 = arith.constant 0.000000e+00 : f32
    %12 = vector.broadcast %cst_12 : f32 to vector<72x16xf32>
    %cst_13 = arith.constant 0.000000e+00 : f32
    %13 = vector.broadcast %cst_13 : f32 to vector<72x32xf32>
    %c0_14 = arith.constant 0 : index
    %c0_15 = arith.constant 0 : index
    %14 = vector.load %arg14[%c0_14, %c0_15] : memref<72x32xf32, #tpu.memory_space<vmem>>, vector<72x32xf32>
    tpu.vector_store %arg14[%c0_14, %c0_15], %13 {strides = array<i32>} : memref<72x32xf32, #tpu.memory_space<vmem>>, vector<72x32xf32>,
    %15 = arith.truncf %6 : vector<72x16xf32> to vector<72x16xbf16>
    %c0_16 = arith.constant 0 : index
    %c0_17 = arith.constant 0 : index
    %c0_18 = arith.constant 0 : index
    %16 = vector.load %arg5[%c0_16, %c0_17, %c0_18] : memref<4x16x64xbf16, #tpu.memory_space<vmem>>, vector<1x16x64xbf16>
    %17 = vector.shape_cast %16 : vector<1x16x64xbf16> to vector<16x64xbf16>
    %cst_19 = arith.constant dense<0.000000e+00> : vector<72x64xf32>
    %18 = tpu.matmul %15, %17, %cst_19 {dimension_numbers = #tpu.dot_dimension_numbers<[1], [0], [0], [1], [0, 0, 1, 1], [], []>} : vector<72x16xbf16>, vector<16x64xbf16>, vector<72x64xf32> -> vector<72x64xf32>
    %19 = vector.extract_strided_slice %18 {offsets = [0, 0], sizes = [71, 32], strides = [1, 1]} : vector<72x64xf32> to vector<71x32xf32>
    %c1 = arith.constant 1 : index
    %c0_20 = arith.constant 0 : index
    %20 = vector.load %arg14[%c1, %c0_20] : memref<72x32xf32, #tpu.memory_space<vmem>>, vector<71x32xf32>
    tpu.vector_store %arg14[%c1, %c0_20], %19 {strides = array<i32>} : memref<72x32xf32, #tpu.memory_space<vmem>>, vector<71x32xf32>,
    %c0_21 = arith.constant 0 : index
    %c0_22 = arith.constant 0 : index
    %21 = vector.load %arg14[%c0_21, %c0_22] : memref<72x32xf32, #tpu.memory_space<vmem>>, vector<72x32xf32>
    %22 = vector.extract_strided_slice %18 {offsets = [0, 32], sizes = [72, 32], strides = [1, 1]} : vector<72x64xf32> to vector<72x32xf32>
    %23 = arith.addf %21, %22 : vector<72x32xf32>
    %24 = vector.extract_strided_slice %11 {offsets = [0, 0], sizes = [72, 32], strides = [1, 1]} : vector<72x128xf32> to vector<72x32xf32>
    %25 = arith.addf %23, %24 : vector<72x32xf32>
    %26 = vector.extract_strided_slice %25 {offsets = [0, 0], sizes = [72, 16], strides = [1, 1]} : vector<72x32xf32> to vector<72x16xf32>
    %27 = math.tanh %26 : vector<72x16xf32>
    %28 = vector.extract_strided_slice %25 {offsets = [0, 16], sizes = [72, 16], strides = [1, 1]} : vector<72x32xf32> to vector<72x16xf32>
    %29 = arith.negf %28 : vector<72x16xf32>
    %30 = math.exp %29 : vector<72x16xf32>
    %cst_23 = arith.constant 1.000000e+00 : f32
    %31 = vector.broadcast %cst_23 : f32 to vector<72x16xf32>
    %32 = arith.addf %31, %30 : vector<72x16xf32>
    %33 = arith.divf %31, %32 : vector<72x16xf32>
    %34 = arith.mulf %27, %33 : vector<72x16xf32>
    %35 = arith.truncf %34 : vector<72x16xf32> to vector<72x16xbf16>
    %c0_24 = arith.constant 0 : index
    %c0_25 = arith.constant 0 : index
    %c0_26 = arith.constant 0 : index
    %36 = vector.load %arg8[%c0_24, %c0_25, %c0_26] : memref<4x16x32xbf16, #tpu.memory_space<vmem>>, vector<1x16x32xbf16>
    %37 = vector.shape_cast %36 : vector<1x16x32xbf16> to vector<16x32xbf16>
    %cst_27 = arith.constant dense<0.000000e+00> : vector<72x32xf32>
    %38 = tpu.matmul %35, %37, %cst_27 {dimension_numbers = #tpu.dot_dimension_numbers<[1], [0], [0], [1], [0, 0, 1, 1], [], []>} : vector<72x16xbf16>, vector<16x32xbf16>, vector<72x32xf32> -> vector<72x32xf32>
    %39 = vector.extract_strided_slice %38 {offsets = [0, 0], sizes = [72, 16], strides = [1, 1]} : vector<72x32xf32> to vector<72x16xf32>
    %40 = arith.addf %39, %6 : vector<72x16xf32>
    %41 = vector.extract_strided_slice %38 {offsets = [0, 16], sizes = [72, 16], strides = [1, 1]} : vector<72x32xf32> to vector<72x16xf32>
    %42 = arith.addf %12, %41 : vector<72x16xf32>
    %43 = arith.truncf %40 : vector<72x16xf32> to vector<72x16xbf16>
    %c1_28 = arith.constant 1 : index
    %c0_29 = arith.constant 0 : index
    %c0_30 = arith.constant 0 : index
    %44 = vector.load %arg5[%c1_28, %c0_29, %c0_30] : memref<4x16x64xbf16, #tpu.memory_space<vmem>>, vector<1x16x64xbf16>
    %45 = vector.shape_cast %44 : vector<1x16x64xbf16> to vector<16x64xbf16>
    %cst_31 = arith.constant dense<0.000000e+00> : vector<72x64xf32>
    %46 = tpu.matmul %43, %45, %cst_31 {dimension_numbers = #tpu.dot_dimension_numbers<[1], [0], [0], [1], [0, 0, 1, 1], [], []>} : vector<72x16xbf16>, vector<16x64xbf16>, vector<72x64xf32> -> vector<72x64xf32>
    %47 = vector.extract_strided_slice %46 {offsets = [0, 0], sizes = [70, 32], strides = [1, 1]} : vector<72x64xf32> to vector<70x32xf32>
    %c2 = arith.constant 2 : index
    %c0_32 = arith.constant 0 : index
    %48 = vector.load %arg14[%c2, %c0_32] : memref<72x32xf32, #tpu.memory_space<vmem>>, vector<70x32xf32>
    tpu.vector_store %arg14[%c2, %c0_32], %47 {strides = array<i32>} : memref<72x32xf32, #tpu.memory_space<vmem>>, vector<70x32xf32>,
    %c0_33 = arith.constant 0 : index
    %c0_34 = arith.constant 0 : index
    %49 = vector.load %arg14[%c0_33, %c0_34] : memref<72x32xf32, #tpu.memory_space<vmem>>, vector<72x32xf32>
    %50 = vector.extract_strided_slice %46 {offsets = [0, 32], sizes = [72, 32], strides = [1, 1]} : vector<72x64xf32> to vector<72x32xf32>
    %51 = arith.addf %49, %50 : vector<72x32xf32>
    %52 = vector.extract_strided_slice %11 {offsets = [0, 32], sizes = [72, 32], strides = [1, 1]} : vector<72x128xf32> to vector<72x32xf32>
    %53 = arith.addf %51, %52 : vector<72x32xf32>
    %54 = vector.extract_strided_slice %53 {offsets = [0, 0], sizes = [72, 16], strides = [1, 1]} : vector<72x32xf32> to vector<72x16xf32>
    %55 = math.tanh %54 : vector<72x16xf32>
    %56 = vector.extract_strided_slice %53 {offsets = [0, 16], sizes = [72, 16], strides = [1, 1]} : vector<72x32xf32> to vector<72x16xf32>
    %57 = arith.negf %56 : vector<72x16xf32>
    %58 = math.exp %57 : vector<72x16xf32>
    %cst_35 = arith.constant 1.000000e+00 : f32
    %59 = vector.broadcast %cst_35 : f32 to vector<72x16xf32>
    %60 = arith.addf %59, %58 : vector<72x16xf32>
    %61 = arith.divf %59, %60 : vector<72x16xf32>
    %62 = arith.mulf %55, %61 : vector<72x16xf32>
    %63 = arith.truncf %62 : vector<72x16xf32> to vector<72x16xbf16>
    %c1_36 = arith.constant 1 : index
    %c0_37 = arith.constant 0 : index
    %c0_38 = arith.constant 0 : index
    %64 = vector.load %arg8[%c1_36, %c0_37, %c0_38] : memref<4x16x32xbf16, #tpu.memory_space<vmem>>, vector<1x16x32xbf16>
    %65 = vector.shape_cast %64 : vector<1x16x32xbf16> to vector<16x32xbf16>
    %cst_39 = arith.constant dense<0.000000e+00> : vector<72x32xf32>
    %66 = tpu.matmul %63, %65, %cst_39 {dimension_numbers = #tpu.dot_dimension_numbers<[1], [0], [0], [1], [0, 0, 1, 1], [], []>} : vector<72x16xbf16>, vector<16x32xbf16>, vector<72x32xf32> -> vector<72x32xf32>
    %67 = vector.extract_strided_slice %66 {offsets = [0, 0], sizes = [72, 16], strides = [1, 1]} : vector<72x32xf32> to vector<72x16xf32>
    %68 = arith.addf %67, %40 : vector<72x16xf32>
    %69 = vector.extract_strided_slice %66 {offsets = [0, 16], sizes = [72, 16], strides = [1, 1]} : vector<72x32xf32> to vector<72x16xf32>
    %70 = arith.addf %42, %69 : vector<72x16xf32>
    %71 = arith.truncf %68 : vector<72x16xf32> to vector<72x16xbf16>
    %c2_40 = arith.constant 2 : index
    %c0_41 = arith.constant 0 : index
    %c0_42 = arith.constant 0 : index
    %72 = vector.load %arg5[%c2_40, %c0_41, %c0_42] : memref<4x16x64xbf16, #tpu.memory_space<vmem>>, vector<1x16x64xbf16>
    %73 = vector.shape_cast %72 : vector<1x16x64xbf16> to vector<16x64xbf16>
    %cst_43 = arith.constant dense<0.000000e+00> : vector<72x64xf32>
    %74 = tpu.matmul %71, %73, %cst_43 {dimension_numbers = #tpu.dot_dimension_numbers<[1], [0], [0], [1], [0, 0, 1, 1], [], []>} : vector<72x16xbf16>, vector<16x64xbf16>, vector<72x64xf32> -> vector<72x64xf32>
    %75 = vector.extract_strided_slice %74 {offsets = [0, 0], sizes = [71, 32], strides = [1, 1]} : vector<72x64xf32> to vector<71x32xf32>
    %c1_44 = arith.constant 1 : index
    %c0_45 = arith.constant 0 : index
    %76 = vector.load %arg14[%c1_44, %c0_45] : memref<72x32xf32, #tpu.memory_space<vmem>>, vector<71x32xf32>
    tpu.vector_store %arg14[%c1_44, %c0_45], %75 {strides = array<i32>} : memref<72x32xf32, #tpu.memory_space<vmem>>, vector<71x32xf32>,
    %c0_46 = arith.constant 0 : index
    %c0_47 = arith.constant 0 : index
    %77 = vector.load %arg14[%c0_46, %c0_47] : memref<72x32xf32, #tpu.memory_space<vmem>>, vector<72x32xf32>
    %78 = vector.extract_strided_slice %74 {offsets = [0, 32], sizes = [72, 32], strides = [1, 1]} : vector<72x64xf32> to vector<72x32xf32>
    %79 = arith.addf %77, %78 : vector<72x32xf32>
    %80 = vector.extract_strided_slice %11 {offsets = [0, 64], sizes = [72, 32], strides = [1, 1]} : vector<72x128xf32> to vector<72x32xf32>
    %81 = arith.addf %79, %80 : vector<72x32xf32>
    %82 = vector.extract_strided_slice %81 {offsets = [0, 0], sizes = [72, 16], strides = [1, 1]} : vector<72x32xf32> to vector<72x16xf32>
    %83 = math.tanh %82 : vector<72x16xf32>
    %84 = vector.extract_strided_slice %81 {offsets = [0, 16], sizes = [72, 16], strides = [1, 1]} : vector<72x32xf32> to vector<72x16xf32>
    %85 = arith.negf %84 : vector<72x16xf32>
    %86 = math.exp %85 : vector<72x16xf32>
    %cst_48 = arith.constant 1.000000e+00 : f32
    %87 = vector.broadcast %cst_48 : f32 to vector<72x16xf32>
    %88 = arith.addf %87, %86 : vector<72x16xf32>
    %89 = arith.divf %87, %88 : vector<72x16xf32>
    %90 = arith.mulf %83, %89 : vector<72x16xf32>
    %91 = arith.truncf %90 : vector<72x16xf32> to vector<72x16xbf16>
    %c2_49 = arith.constant 2 : index
    %c0_50 = arith.constant 0 : index
    %c0_51 = arith.constant 0 : index
    %92 = vector.load %arg8[%c2_49, %c0_50, %c0_51] : memref<4x16x32xbf16, #tpu.memory_space<vmem>>, vector<1x16x32xbf16>
    %93 = vector.shape_cast %92 : vector<1x16x32xbf16> to vector<16x32xbf16>
    %cst_52 = arith.constant dense<0.000000e+00> : vector<72x32xf32>
    %94 = tpu.matmul %91, %93, %cst_52 {dimension_numbers = #tpu.dot_dimension_numbers<[1], [0], [0], [1], [0, 0, 1, 1], [], []>} : vector<72x16xbf16>, vector<16x32xbf16>, vector<72x32xf32> -> vector<72x32xf32>
    %95 = vector.extract_strided_slice %94 {offsets = [0, 0], sizes = [72, 16], strides = [1, 1]} : vector<72x32xf32> to vector<72x16xf32>
    %96 = arith.addf %95, %68 : vector<72x16xf32>
    %97 = vector.extract_strided_slice %94 {offsets = [0, 16], sizes = [72, 16], strides = [1, 1]} : vector<72x32xf32> to vector<72x16xf32>
    %98 = arith.addf %70, %97 : vector<72x16xf32>
    %99 = arith.truncf %96 : vector<72x16xf32> to vector<72x16xbf16>
    %c3 = arith.constant 3 : index
    %c0_53 = arith.constant 0 : index
    %c0_54 = arith.constant 0 : index
    %100 = vector.load %arg5[%c3, %c0_53, %c0_54] : memref<4x16x64xbf16, #tpu.memory_space<vmem>>, vector<1x16x64xbf16>
    %101 = vector.shape_cast %100 : vector<1x16x64xbf16> to vector<16x64xbf16>
    %cst_55 = arith.constant dense<0.000000e+00> : vector<72x64xf32>
    %102 = tpu.matmul %99, %101, %cst_55 {dimension_numbers = #tpu.dot_dimension_numbers<[1], [0], [0], [1], [0, 0, 1, 1], [], []>} : vector<72x16xbf16>, vector<16x64xbf16>, vector<72x64xf32> -> vector<72x64xf32>
    %103 = vector.extract_strided_slice %102 {offsets = [0, 0], sizes = [70, 32], strides = [1, 1]} : vector<72x64xf32> to vector<70x32xf32>
    %c2_56 = arith.constant 2 : index
    %c0_57 = arith.constant 0 : index
    %104 = vector.load %arg14[%c2_56, %c0_57] : memref<72x32xf32, #tpu.memory_space<vmem>>, vector<70x32xf32>
    tpu.vector_store %arg14[%c2_56, %c0_57], %103 {strides = array<i32>} : memref<72x32xf32, #tpu.memory_space<vmem>>, vector<70x32xf32>,
    %c0_58 = arith.constant 0 : index
    %c0_59 = arith.constant 0 : index
    %105 = vector.load %arg14[%c0_58, %c0_59] : memref<72x32xf32, #tpu.memory_space<vmem>>, vector<72x32xf32>
    %106 = vector.extract_strided_slice %102 {offsets = [0, 32], sizes = [72, 32], strides = [1, 1]} : vector<72x64xf32> to vector<72x32xf32>
    %107 = arith.addf %105, %106 : vector<72x32xf32>
    %108 = vector.extract_strided_slice %11 {offsets = [0, 96], sizes = [72, 32], strides = [1, 1]} : vector<72x128xf32> to vector<72x32xf32>
    %109 = arith.addf %107, %108 : vector<72x32xf32>
    %110 = vector.extract_strided_slice %109 {offsets = [0, 0], sizes = [72, 16], strides = [1, 1]} : vector<72x32xf32> to vector<72x16xf32>
    %111 = math.tanh %110 : vector<72x16xf32>
    %112 = vector.extract_strided_slice %109 {offsets = [0, 16], sizes = [72, 16], strides = [1, 1]} : vector<72x32xf32> to vector<72x16xf32>
    %113 = arith.negf %112 : vector<72x16xf32>
    %114 = math.exp %113 : vector<72x16xf32>
    %cst_60 = arith.constant 1.000000e+00 : f32
    %115 = vector.broadcast %cst_60 : f32 to vector<72x16xf32>
    %116 = arith.addf %115, %114 : vector<72x16xf32>
    %117 = arith.divf %115, %116 : vector<72x16xf32>
    %118 = arith.mulf %111, %117 : vector<72x16xf32>
    %119 = arith.truncf %118 : vector<72x16xf32> to vector<72x16xbf16>
    %c3_61 = arith.constant 3 : index
    %c0_62 = arith.constant 0 : index
    %c0_63 = arith.constant 0 : index
    %120 = vector.load %arg8[%c3_61, %c0_62, %c0_63] : memref<4x16x32xbf16, #tpu.memory_space<vmem>>, vector<1x16x32xbf16>
    %121 = vector.shape_cast %120 : vector<1x16x32xbf16> to vector<16x32xbf16>
    %cst_64 = arith.constant dense<0.000000e+00> : vector<72x32xf32>
    %122 = tpu.matmul %119, %121, %cst_64 {dimension_numbers = #tpu.dot_dimension_numbers<[1], [0], [0], [1], [0, 0, 1, 1], [], []>} : vector<72x16xbf16>, vector<16x32xbf16>, vector<72x32xf32> -> vector<72x32xf32>
    %123 = vector.extract_strided_slice %122 {offsets = [0, 16], sizes = [72, 16], strides = [1, 1]} : vector<72x32xf32> to vector<72x16xf32>
    %124 = arith.addf %98, %123 : vector<72x16xf32>
    %cst_65 = arith.constant 0.000000e+00 : f32
    %125 = vector.broadcast %cst_65 : f32 to vector<72x16xf32>
    %126 = arith.maximumf %124, %125 : vector<72x16xf32>
    %127 = arith.truncf %126 : vector<72x16xf32> to vector<72x16xbf16>
    %c0_66 = arith.constant 0 : index
    %c0_67 = arith.constant 0 : index
    %128 = vector.load %arg9[%c0_66, %c0_67] : memref<16x16xbf16, #tpu.memory_space<vmem>>, vector<16x16xbf16>
    %cst_68 = arith.constant dense<0.000000e+00> : vector<72x16xf32>
    %129 = tpu.matmul %127, %128, %cst_68 {dimension_numbers = #tpu.dot_dimension_numbers<[1], [0], [0], [1], [0, 0, 1, 1], [], []>} : vector<72x16xbf16>, vector<16x16xbf16>, vector<72x16xf32> -> vector<72x16xf32>
    %c0_69 = arith.constant 0 : index
    %c0_70 = arith.constant 0 : index
    %130 = vector.load %arg10[%c0_69, %c0_70] : memref<1x16xf32, #tpu.memory_space<vmem>>, vector<1x16xf32>
    %131 = vector.broadcast %130 : vector<1x16xf32> to vector<72x16xf32>
    %132 = arith.addf %129, %131 : vector<72x16xf32>
    %cst_71 = arith.constant 0.000000e+00 : f32
    %133 = vector.broadcast %cst_71 : f32 to vector<72x16xf32>
    %134 = arith.maximumf %132, %133 : vector<72x16xf32>
    %135 = arith.truncf %134 : vector<72x16xf32> to vector<72x16xbf16>
    %c0_72 = arith.constant 0 : index
    %c0_73 = arith.constant 0 : index
    %136 = vector.load %arg11[%c0_72, %c0_73] : memref<16x128xbf16, #tpu.memory_space<vmem>>, vector<16x128xbf16>
    %cst_74 = arith.constant dense<0.000000e+00> : vector<72x128xf32>
    %137 = tpu.matmul %135, %136, %cst_74 {dimension_numbers = #tpu.dot_dimension_numbers<[1], [0], [0], [1], [0, 0, 1, 1], [], []>} : vector<72x16xbf16>, vector<16x128xbf16>, vector<72x128xf32> -> vector<72x128xf32>
    %c0_75 = arith.constant 0 : index
    %c0_76 = arith.constant 0 : index
    %138 = vector.load %arg12[%c0_75, %c0_76] : memref<1x128xf32, #tpu.memory_space<vmem>>, vector<1x128xf32>
    %139 = vector.broadcast %138 : vector<1x128xf32> to vector<72x128xf32>
    %140 = arith.addf %137, %139 : vector<72x128xf32>
    %c0_77 = arith.constant 0 : index
    %c0_78 = arith.constant 0 : index
    %141 = vector.load %arg13[%c0_77, %c0_78] : memref<72x128xf32, #tpu.memory_space<vmem>>, vector<72x128xf32>
    tpu.vector_store %arg13[%c0_77, %c0_78], %140 {strides = array<i32>} : memref<72x128xf32, #tpu.memory_space<vmem>>, vector<72x128xf32>,
    return
  }
  func.func @transform_0(%arg0: i32) -> (i32, i32) {
    %c0_i32 = arith.constant 0 : i32
    %c0_i32_0 = arith.constant 0 : i32
    %c0_i32_1 = arith.constant 0 : i32
    return %c0_i32, %c0_i32_0 : i32, i32
  }
  func.func @transform_1(%arg0: i32) -> (i32, i32) {
    %c0_i32 = arith.constant 0 : i32
    %c0_i32_0 = arith.constant 0 : i32
    %c0_i32_1 = arith.constant 0 : i32
    return %c0_i32, %c0_i32_0 : i32, i32
  }
  func.func @transform_2(%arg0: i32) -> (i32, i32) {
    %c0_i32 = arith.constant 0 : i32
    %c0_i32_0 = arith.constant 0 : i32
    %c0_i32_1 = arith.constant 0 : i32
    return %c0_i32, %c0_i32_0 : i32, i32
  }
  func.func @transform_3(%arg0: i32) -> (i32, i32) {
    %c0_i32 = arith.constant 0 : i32
    %c0_i32_0 = arith.constant 0 : i32
    %c0_i32_1 = arith.constant 0 : i32
    return %c0_i32, %c0_i32_0 : i32, i32
  }
  func.func @transform_4(%arg0: i32) -> (i32, i32, i32) {
    %c0_i32 = arith.constant 0 : i32
    %c0_i32_0 = arith.constant 0 : i32
    %c0_i32_1 = arith.constant 0 : i32
    %c0_i32_2 = arith.constant 0 : i32
    return %c0_i32, %c0_i32_0, %c0_i32_1 : i32, i32, i32
  }
  func.func @transform_5(%arg0: i32) -> (i32, i32) {
    %c0_i32 = arith.constant 0 : i32
    %c0_i32_0 = arith.constant 0 : i32
    %c0_i32_1 = arith.constant 0 : i32
    return %c0_i32, %c0_i32_0 : i32, i32
  }
  func.func @transform_6(%arg0: i32) -> (i32, i32) {
    %c0_i32 = arith.constant 0 : i32
    %c0_i32_0 = arith.constant 0 : i32
    %c0_i32_1 = arith.constant 0 : i32
    return %c0_i32, %c0_i32_0 : i32, i32
  }
  func.func @transform_7(%arg0: i32) -> (i32, i32, i32) {
    %c0_i32 = arith.constant 0 : i32
    %c0_i32_0 = arith.constant 0 : i32
    %c0_i32_1 = arith.constant 0 : i32
    %c0_i32_2 = arith.constant 0 : i32
    return %c0_i32, %c0_i32_0, %c0_i32_1 : i32, i32, i32
  }
  func.func @transform_8(%arg0: i32) -> (i32, i32) {
    %c0_i32 = arith.constant 0 : i32
    %c0_i32_0 = arith.constant 0 : i32
    %c0_i32_1 = arith.constant 0 : i32
    return %c0_i32, %c0_i32_0 : i32, i32
  }
  func.func @transform_9(%arg0: i32) -> (i32, i32) {
    %c0_i32 = arith.constant 0 : i32
    %c0_i32_0 = arith.constant 0 : i32
    %c0_i32_1 = arith.constant 0 : i32
    return %c0_i32, %c0_i32_0 : i32, i32
  }
  func.func @transform_10(%arg0: i32) -> (i32, i32) {
    %c0_i32 = arith.constant 0 : i32
    %c0_i32_0 = arith.constant 0 : i32
    %c0_i32_1 = arith.constant 0 : i32
    return %c0_i32, %c0_i32_0 : i32, i32
  }
  func.func @transform_11(%arg0: i32) -> (i32, i32) {
    %c0_i32 = arith.constant 0 : i32
    %c0_i32_0 = arith.constant 0 : i32
    %c0_i32_1 = arith.constant 0 : i32
    return %c0_i32, %c0_i32_0 : i32, i32
  }
  func.func @transform_12(%arg0: i32) -> (i32, i32) {
    %c0_i32 = arith.constant 0 : i32
    %c0_i32_0 = arith.constant 0 : i32
    %c0_i32_1 = arith.constant 0 : i32
    return %c0_i32, %c0_i32_0 : i32, i32
  }
}

</mosaic_0001>

<bundles_post_ra>
// kernel: tpu_custom_call.1
= control target key start
LH: loop header
LB: loop body
LE: loop exit
PB: predicated region body
PF: predicated region fallthrough
CT: control target
= control target key end

     0   :  { %17 = vsyncpa [#allocation4], 0  ;;  %s3674_s0 = inlined_call_operand.vmem [shape: bf16[72,16], index: 0, kind: input, shape index: {}]   ;;  %s3675_s1 = inlined_call_operand.vmem [shape: bf16[72,16], index: 1, kind: input, shape index: {}]   ;;  %s3676_s2 = inlined_call_operand.vmem [shape: bf16[16,16], index: 2, kind: input, shape index: {}]   ;;  %s3677_s3 = inlined_call_operand.vmem [shape: f32[1,16], index: 3, kind: input, shape index: {}]   ;;  %s3678_s4 = inlined_call_operand.vmem [shape: bf16[4,16,64], index: 4, kind: input, shape index: {}]   ;;  %s3679_s5 = inlined_call_operand.vmem [shape: bf16[16,128], index: 5, kind: input, shape index: {}]   ;;  %s3680_s6 = inlined_call_operand.hbm [shape: f32[1,128], index: 6, kind: input, shape index: {}]   ;;  %s3681_s7 = inlined_call_operand.vmem [shape: bf16[4,16,32], index: 7, kind: input, shape index: {}]   ;;  %s3682_s8 = inlined_call_operand.vmem [shape: bf16[16,16], index: 8, kind: input, shape index: {}]   ;;  %s3683_s9 = inlined_call_operand.hbm [shape: f32[1,16], index: 9, kind: input, shape index: {}]   ;;  %s3684_s10 = inlined_call_operand.vmem [shape: bf16[16,128], index: 10, kind: input, shape index: {}]   ;;  %s3685_s11 = inlined_call_operand.hbm [shape: f32[1,128], index: 11, kind: input, shape index: {}]   ;;  %s3686_s12 = inlined_call_operand.hbm [shape: f32[72,128], index: 12, kind: output, shape index: {}]  }
   0x1   :  { %18 = vsyncpa [#allocation7], 0  ;;  %s52_s23 = sshll.u32 %s3683_s9, 4  ;;  %s53_s23 = int_to_ptr.hbm [resolvable:$true] %s52_s23 }
   0x2   :  { %19 = vsyncpa [#allocation5], 0  ;;  %s2849_s24 = smov [#allocation6]   ;;  %s37_s28 = sshll.u32 %s3680_s6, 4  ;;  %s38_s28 = int_to_ptr.hbm [resolvable:$true] %s37_s28 }
   0x3   :  { %s54_s25 = sshll.u32 %s2849_s24, 4  ;;  %s2850_s29 = smov [#allocation3]   ;;  %s55_s25 = int_to_ptr.vmem [resolvable:$true] %s54_s25 }
   0x4   :  { %57 = dma.hbm_to_vmem [thread:$0]  %s53_s23, 16, %s55_s25, [#allocation7]  }
   0x5   :  { %s39_s30 = sshll.u32 %s2850_s29, 4  ;;  %s65_s15 = sshll.u32 %s3685_s11, 4  ;;  %s40_s30 = int_to_ptr.vmem [resolvable:$true] %s39_s30  ;;  %s66_s15 = int_to_ptr.hbm [resolvable:$true] %s65_s15 }
   0x6   :  { %42 = dma.hbm_to_vmem [thread:$0]  %s38_s28, 16, %s40_s30, [#allocation4]  }
   0x7   :  { %s2851_s9 = smov [#allocation8]  }
   0x8   :  { %s67_s16 = sshll.u32 %s2851_s9, 4  ;;  %s68_s16 = int_to_ptr.vmem [resolvable:$true] %s67_s16 }
   0x9   :  { %70 = dma.hbm_to_vmem [thread:$0]  %s66_s15, 16, %s68_s16, [#allocation7]  }
   0xa   :  { %2843 = dma.done.wait [#allocation4], 16  }
   0xb   :  { %2844 = vsyncadd [#allocation4], 4294967280 }
   0xc   :  { %2845 = dma.done.wait [#allocation7], 32  }
   0xd   :  { %2846 = vsyncadd [#allocation7], 4294967264  ;;  %v2504_v0 = vld [vmem:[%s3676_s2] sm:$0xff]  ;;  %vm137_vm0 = vcmask 130048   ;;  %v2497_v2 = vld [vmem:[%s3674_s0 + $0x8] sm:$0xff]  ;;  %vm269_vm1 = vcmask 261120  }
   0xe   :  { %v2496_v1 = vld [vmem:[%s3674_s0] sm:$0xff]  ;;  %160 = vmatpush.bf16.msra.mxu0 %v2504_v0  ;;  %v2498_v3 = vld [vmem:[%s3674_s0 + $0x10] sm:$0xff]  ;;  %v2499_v4 = vld [vmem:[%s3674_s0 + $0x18] sm:$0xff]  ;;  %v2852_v28 = vmov 0.0   ;;  %s2853_s16 = smov 96   ;;  %vm348_vm2 = vcmask 260096  }
   0xf   :  { %v92_v5 = vld [vmem:[%s3674_s0 + $0x20] sm:$0xf]  ;;  %270 = vst.msk [vmem:[#allocation2] sm:$0xff] %vm269_vm1, %v2852_v28  ;;  %v2501_v33 = vld [vmem:[%s3675_s1 + $0x8] sm:$0xff]  ;;  %v2502_v38 = vld [vmem:[%s3675_s1 + $0x10] sm:$0xff]  ;;  %s2855_s26 = smov 64  }
  0x10   :  { %v125_v6 = vunpack.c.l.b16 %v92_v5  ;;  %v2506_v8 = vld [vmem:[%s3678_s4] sm:$0xff]  ;;  %271 = vst.msk [vmem:[#allocation2 + $0x8] sm:$0xff] %vm269_vm1, %v2852_v28  ;;  %v2503_v40 = vld [vmem:[%s3675_s1 + $0x18] sm:$0xff]  ;;  %v3044_v54 = vld [vmem:[#allocation3] ss:$0 sm:$0xff]  ;;  %s2858_s6 = smov 128  }
  0x11   :  { %2328 = vmatmul.msk.bf16.vlgmr.msra.gmra.mxu0 %vm137_vm0, %v2496_v1  ;;  %314 = vmatpush.bf16.msra.mxu2 %v2506_v8  ;;  %v2527_v10 = vld [vmem:[%s3677_s3] ss:$0 sm:$0xff]  ;;  %272 = vst.msk [vmem:[#allocation2 + $0x10] sm:$0xff] %vm269_vm1, %v2852_v28  ;;  %s2859_s17 = smov 8  }
  0x12   :  { %v130_v7 = vpack.c.b16 %v125_v6, %v125_v6  ;;  %v2505_v25 = vld [vmem:[%s3679_s5] sm:$0xff]  ;;  %273 = vst.msk [vmem:[#allocation2 + $0x18] sm:$0xff] %vm269_vm1, %v2852_v28 }
  0x13   :  { %v2500_v26 = vld [vmem:[%s3675_s1] sm:$0xff]  ;;  %243 = vmatpush.bf16.msra.mxu1 %v2505_v25  ;;  %274 = vst.msk [vmem:[#allocation2 + $0x20] sm:$0xff] %vm269_vm1, %v2852_v28 }
  0x14   :  { %275 = vst.msk [vmem:[#allocation2 + $0x28] sm:$0xff] %vm269_vm1, %v2852_v28 }
  0x15   :  { %276 = vst.msk [vmem:[#allocation2 + $0x30] sm:$0xff] %vm269_vm1, %v2852_v28 }
  0x16   :  { %2353 = vmatmul.msk.bf16.vlgmr.msra.gmra.mxu1 %vm137_vm0, %v2500_v26  ;;  %277 = vst.msk [vmem:[#allocation2 + $0x38] sm:$0xff] %vm269_vm1, %v2852_v28 }
  0x17   :  { %278 = vst.msk [vmem:[#allocation2 + $0x40] sm:$0xff] %vm269_vm1, %v2852_v28 }
  0x21   :  { %2329 = vmatmul.msk.bf16.gmra.mxu0 %vm137_vm0, %v2497_v2 }
  0x26   :  { %2354 = vmatmul.msk.bf16.gmra.mxu1 %vm137_vm0, %v2501_v33 }
  0x31   :  { %2330 = vmatmul.msk.bf16.gmra.mxu0 %vm137_vm0, %v2498_v3 }
  0x36   :  { %2355 = vmatmul.msk.bf16.gmra.mxu1 %vm137_vm0, %v2502_v38 }
  0x41   :  { %2331 = vmatmul.msk.bf16.gmra.mxu0 %vm137_vm0, %v2499_v4 }
  0x46   :  { %2356 = vmatmul.msk.bf16.gmra.mxu1 %vm137_vm0, %v2503_v40 }
  0x51   :  { %2332 = vmatmul.msk.bf16.gmra.mxu0 %vm137_vm0, %v130_v7 }
  0x8e   :  { %v162_v9 = vpop.f32.mrf.mxu0 }
  0x8f   :  { %v2963_v12 = vadd.f32 %v2527_v10, %v162_v9 }
  0x93   :  { %v245_v50 = vpop.f32.mrf.mxu1 }
  0x94   :  { %v3047_v55 = vadd.f32 %v3044_v54, %v245_v50 }
  0x96   :  { %v164_v11 = vpop.f32.mrf.mxu0 }
  0x97   :  { %v2965_v13 = vadd.f32 %v2527_v10, %v164_v11 }
  0x99   :  { %v279_v14 = vpack.c.bf16 %v2965_v13, %v2963_v12 }
  0x9b   :  { %2362 = vmatmul.msk.bf16.vlgmr.msra.gmra.mxu2 %vm137_vm0, %v279_v14  ;;  %v247_v51 = vpop.f32.mrf.mxu1 }
  0x9c   :  { %v3057_v3 = vadd.f32 %v3044_v54, %v247_v51 }
  0x9e   :  { %v167_v15 = vpop.f32.mrf.mxu0 }
  0x9f   :  { %v2970_v16 = vadd.f32 %v2527_v10, %v167_v15 }
  0xa3   :  { %v250_v52 = vpop.f32.mrf.mxu1 }
  0xa4   :  { %v3068_v15 = vadd.f32 %v3044_v54, %v250_v52 }
  0xa6   :  { %v169_v17 = vpop.f32.mrf.mxu0 }
  0xa7   :  { %v2972_v18 = vadd.f32 %v2527_v10, %v169_v17 }
  0xa9   :  { %v280_v19 = vpack.c.bf16 %v2972_v18, %v2970_v16 }
  0xab   :  { %2363 = vmatmul.msk.bf16.gmra.mxu2 %vm137_vm0, %v280_v19  ;;  %v252_v53 = vpop.f32.mrf.mxu1 }
  0xac   :  { %v3085_v40 = vadd.f32 %v3044_v54, %v252_v53 }
  0xae   :  { %v172_v20 = vpop.f32.mrf.mxu0 }
  0xaf   :  { %v2977_v21 = vadd.f32 %v2527_v10, %v172_v20 }
  0xb3   :  { %v255_v59 = vpop.f32.mrf.mxu1 }
  0xb4   :  { %v3054_v62 = vadd.f32 %v3044_v54, %v255_v59 }
  0xb6   :  { %v174_v22 = vpop.f32.mrf.mxu0 }
  0xb7   :  { %v2979_v23 = vadd.f32 %v2527_v10, %v174_v22 }
  0xb9   :  { %v281_v24 = vpack.c.bf16 %v2979_v23, %v2977_v21 }
  0xbb   :  { %2364 = vmatmul.msk.bf16.gmra.mxu2 %vm137_vm0, %v281_v24  ;;  %v257_v8 = vpop.f32.mrf.mxu1 }
  0xbc   :  { %v3071_v17 = vadd.f32 %v3044_v54, %v257_v8 }
  0xbe   :  { %v177_v27 = vpop.f32.mrf.mxu0 }
  0xbf   :  { %v2995_v29 = vadd.f32 %v2527_v10, %v177_v27 }
  0xc6   :  { %v179_v30 = vpop.f32.mrf.mxu0 }
  0xc7   :  { %v2999_v31 = vadd.f32 %v2527_v10, %v179_v30  ;;  %v101_v30 = vld [vmem:[%s3675_s1 + $0x20] sm:$0xf]  ;;  %s2854_s1 = smov 112  }
  0xc9   :  { %v282_v32 = vpack.c.bf16 %v2999_v31, %v2995_v29 }
  0xcb   :  { %2365 = vmatmul.msk.bf16.gmra.mxu2 %vm137_vm0, %v282_v32 }
  0xce   :  { %v182_v34 = vpop.f32.mrf.mxu0 }
  0xcf   :  { %v3011_v35 = vadd.f32 %v2527_v10, %v182_v34 }
  0xd1   :  { %v283_v37 = vpack.c.bf16 %v3011_v35, %v3011_v35 }
  0xd6   :  { %v184_v36 = vpop.f32.mrf.mxu0 }
  0xd7   :  { %v209_v36 = vunpack.c.l.b16 %v101_v30 }
  0xdb   :  { %2366 = vmatmul.msk.bf16.gmra.mxu2 %vm137_vm0, %v283_v37 }
 0x11e   :  { %v316_v39 = vpop.f32.mrf.mxu2 }
 0x11f   :  { %340 = vst.msk [vmem:[#allocation2 + $0x1] sm:$0xff] %vm269_vm1, %v316_v39  ;;  %368 = vrot.lane.b32.xlu0 %v316_v39, %s2853_s16 }
 0x126   :  { %v318_v41 = vpop.f32.mrf.mxu2  ;;  %v350_v57 = vld [vmem:[#allocation2] sm:$0xff] }
 0x127   :  { %341 = vst.msk [vmem:[#allocation2 + $0x9] sm:$0xff] %vm269_vm1, %v318_v41  ;;  %370 = vrot.lane.b32.xlu0 %v318_v41, %s2853_s16 }
 0x12e   :  { %v321_v42 = vpop.f32.mrf.mxu2  ;;  %v351_v0 = vld [vmem:[#allocation2 + $0x8] sm:$0xff] }
 0x12f   :  { %342 = vst.msk [vmem:[#allocation2 + $0x11] sm:$0xff] %vm269_vm1, %v321_v42  ;;  %372 = vrot.lane.b32.xlu1 %v321_v42, %s2853_s16  ;;  %v214_v42 = vpack.c.b16 %v209_v36, %v209_v36 }
 0x131   :  { %2357 = vmatmul.msk.bf16.gmra.mxu1 %vm137_vm0, %v214_v42 }
 0x136   :  { %v323_v43 = vpop.f32.mrf.mxu2  ;;  %v352_v20 = vld [vmem:[#allocation2 + $0x10] sm:$0xff] }
 0x137   :  { %343 = vst.msk [vmem:[#allocation2 + $0x19] sm:$0xff] %vm269_vm1, %v323_v43  ;;  %374 = vrot.lane.b32.xlu1 %v323_v43, %s2853_s16 }
 0x13e   :  { %v326_v44 = vpop.f32.mrf.mxu2 }
 0x13f   :  { %344 = vst.msk [vmem:[#allocation2 + $0x21] sm:$0xff] %vm269_vm1, %v326_v44  ;;  %376 = vrot.lane.b32.xlu2 %v326_v44, %s2853_s16 }
 0x146   :  { %v328_v45 = vpop.f32.mrf.mxu2  ;;  %v354_v2 = vld [vmem:[#allocation2 + $0x20] sm:$0xff] }
 0x147   :  { %345 = vst.msk [vmem:[#allocation2 + $0x29] sm:$0xff] %vm269_vm1, %v328_v45  ;;  %378 = vrot.lane.b32.xlu2 %v328_v45, %s2853_s16  ;;  %v353_v45 = vld [vmem:[#allocation2 + $0x18] sm:$0xff] }
 0x14e   :  { %v331_v46 = vpop.f32.mrf.mxu2  ;;  %v355_v24 = vld [vmem:[#allocation2 + $0x28] sm:$0xff] }
 0x14f   :  { %346 = vst.msk [vmem:[#allocation2 + $0x31] sm:$0xff] %vm269_vm1, %v331_v46  ;;  %380 = vrot.lane.b32.xlu0 %v331_v46, %s2853_s16 }
 0x156   :  { %v333_v47 = vpop.f32.mrf.mxu2 }
 0x157   :  { %347 = vst.msk [vmem:[#allocation2 + $0x39] sm:$0xff] %vm269_vm1, %v333_v47  ;;  %382 = vrot.lane.b32.xlu1 %v333_v47, %s2853_s16 }
 0x15e   :  { %v3040_v48 = vpop.f32.mrf.mxu2 }
 0x15f   :  { %349 = vst.msk [vmem:[#allocation2 + $0x41] sm:$0x7f] %vm348_vm2, %v3040_v48 }
 0x166   :  { %v338_v49 = vpop.f32.mrf.mxu2 }
 0x191   :  { %v369_v56 = vpop.permute.xlu0 %368 }
 0x192   :  { %v395_v58 = vadd.f32 %v369_v56, %v350_v57 }
 0x194   :  { %v3050_v60 = vadd.f32 %v395_v58, %v3047_v55 }
 0x196   :  { %v2367_v61 = vmul.f32 -1.442695, %v3050_v60 }
 0x198   :  { %2531 = vpow2.f32 %v2367_v61 }
 0x199   :  { %v371_v63 = vpop.permute.xlu0 %370  ;;  %v377_v1 = vpop.permute.xlu2 %376 }
 0x19a   :  { %v396_v4 = vadd.f32 %v371_v63, %v351_v0  ;;  %v399_v5 = vadd.f32 %v377_v1, %v354_v2 }
 0x19c   :  { %v3060_v6 = vadd.f32 %v396_v4, %v3057_v3  ;;  %v3063_v7 = vadd.f32 %v399_v5, %v3054_v62 }
 0x19e   :  { %v2532_v9 = vpop.eup %2531  ;;  %v2368_v10 = vmul.f32 -1.442695, %v3060_v6  ;;  %v2371_v11 = vmul.f32 -1.442695, %v3063_v7 }
 0x19f   :  { %v449_v14 = vadd.f32 1.0, %v2532_v9 }
 0x1a0   :  { %2533 = vpow2.f32 %v2368_v10 }
 0x1a1   :  { %2535 = vrcp.f32 %v449_v14  ;;  %v373_v19 = vpop.permute.xlu1 %372  ;;  %v379_v22 = vpop.permute.xlu2 %378  ;;  %v469_v49 = vand.u32 2147483648, %v449_v14  ;;  %v467_v52 = vand.u32 2147483647, %v449_v14  ;;  %vm463_vm4 = vweird.f32 %v449_v14 }
 0x1a2   :  { %2537 = vpow2.f32 %v2371_v11  ;;  %v397_v25 = vadd.f32 %v373_v19, %v352_v20  ;;  %v400_v26 = vadd.f32 %v379_v22, %v355_v24 }
 0x1a3   :  { %v470_v61 = vor.u32 1.1754944e-38, %v469_v49  ;;  %vm468_vm6 = vcmp.eq.f32.partialorder %v467_v52, 8.507059e+37 }
 0x1a4   :  { %v3074_v27 = vadd.f32 %v397_v25, %v3068_v15  ;;  %v3077_v28 = vadd.f32 %v400_v26, %v3071_v17 }
 0x1a6   :  { %v2534_v32 = vpop.eup %2533  ;;  %v2369_v33 = vmul.f32 -1.442695, %v3074_v27  ;;  %v2372_v34 = vmul.f32 -1.442695, %v3077_v28 }
 0x1a7   :  { %v2536_v37 = vpop.eup %2535  ;;  %v450_v38 = vadd.f32 1.0, %v2534_v32 }
 0x1a8   :  { %v2538_v39 = vpop.eup %2537  ;;  %2539 = vpow2.f32 %v2369_v33  ;;  %v459_v41 = vmul.f32 %v2536_v37, %v449_v14  ;;  %vm464_vm3 = vweird.f32 %v2536_v37 }
 0x1a9   :  { %2541 = vrcp.f32 %v450_v38  ;;  %v3087_v43 = vadd.f32 1.0, %v2538_v39  ;;  %v375_v44 = vpop.permute.xlu1 %374  ;;  %vm465_vm5 = vmor %vm463_vm4, %vm464_vm3  ;;  %v484_v10 = vand.u32 2147483648, %v450_v38  ;;  %v482_v14 = vand.u32 2147483647, %v450_v38 }
 0x1aa   :  { %2543 = vpow2.f32 %v2372_v34  ;;  %v398_v46 = vadd.f32 %v375_v44, %v353_v45  ;;  %v460_v47 = vsub.f32 1.0, %v459_v41  ;;  %vm478_vm8 = vweird.f32 %v450_v38 }
 0x1ab   :  { %2545 = vrcp.f32 %v3087_v43  ;;  %v485_v30 = vor.u32 1.1754944e-38, %v484_v10  ;;  %vm483_vm10 = vcmp.eq.f32.partialorder %v482_v14, 8.507059e+37  ;;  %vm523_vm12 = vweird.f32 %v3087_v43 }
 0x1ac   :  { %v3092_v50 = vadd.f32 %v398_v46, %v3085_v40  ;;  %v461_v51 = vmul.f32 %v2536_v37, %v460_v47  ;;  %v527_v42 = vand.u32 2147483647, %v3087_v43  ;;  %v529_v44 = vand.u32 2147483648, %v3087_v43 }
 0x1ae   :  { %v2540_v53 = vpop.eup %2539  ;;  %v2370_v56 = vmul.f32 -1.442695, %v3092_v50  ;;  %v462_v57 = vadd.f32 %v2536_v37, %v461_v51  ;;  %vm528_vm4 = vcmp.eq.f32.partialorder %v527_v42, 8.507059e+37  ;;  %v357_v42 = vld [vmem:[#allocation2 + $0x38] sm:$0xff] }
 0x1af   :  { %v2542_v58 = vpop.eup %2541  ;;  %v3095_v59 = vadd.f32 1.0, %v2540_v53 }
 0x1b0   :  { %v2544_v63 = vpop.eup %2543  ;;  %2547 = vpow2.f32 %v2370_v56  ;;  %v466_v0 = vsel %vm465_vm5, %v2536_v37, %v462_v57  ;;  %v474_v1 = vmul.f32 %v2542_v58, %v450_v38  ;;  %vm479_vm7 = vweird.f32 %v2542_v58  ;;  %v260_v37 = vpop.f32.mrf.mxu1 }
 0x1b1   :  { %v2546_v2 = vpop.eup %2545  ;;  %2549 = vrcp.f32 %v3095_v59  ;;  %v3098_v4 = vadd.f32 1.0, %v2544_v63  ;;  %v471_v5 = vsel %vm468_vm6, %v470_v61, %v466_v0  ;;  %vm480_vm9 = vmor %vm478_vm8, %vm479_vm7  ;;  %v499_v45 = vand.u32 2147483648, %v3095_v59 }
 0x1b2   :  { %602 = vrot.lane.b32.xlu2 %v471_v5, %s2854_s1  ;;  %v475_v8 = vsub.f32 1.0, %v474_v1  ;;  %v519_v9 = vmul.f32 %v2546_v2, %v3087_v43  ;;  %vm524_vm11 = vweird.f32 %v2546_v2  ;;  %v497_v47 = vand.u32 2147483647, %v3095_v59  ;;  %v356_v5 = vld [vmem:[#allocation2 + $0x30] sm:$0xff] }
 0x1b3   :  { %2551 = vrcp.f32 %v3098_v4  ;;  %vm3117_vm14 = vmor %vm523_vm12, %vm524_vm11  ;;  %vm493_vm15 = vweird.f32 %v3095_v59  ;;  %v3126_v57 = vadd.f32 %v3044_v54, %v260_v37  ;;  %v500_v61 = vor.u32 1.1754944e-38, %v499_v45 }
 0x1b4   :  { %v476_v11 = vmul.f32 %v2542_v58, %v475_v8  ;;  %v520_v19 = vsub.f32 1.0, %v519_v9  ;;  %vm498_vm5 = vcmp.eq.f32.partialorder %v497_v47, 8.507059e+37  ;;  %vm538_vm7 = vweird.f32 %v3098_v4 }
 0x1b5   :  { %v542_v14 = vand.u32 2147483647, %v3098_v4 }
 0x1b6   :  { %v2548_v20 = vpop.eup %2547  ;;  %v477_v22 = vadd.f32 %v2542_v58, %v476_v11  ;;  %v521_v24 = vmul.f32 %v2546_v2, %v520_v19  ;;  %v544_v19 = vand.u32 2147483648, %v3098_v4 }
 0x1b7   :  { %v2550_v25 = vpop.eup %2549  ;;  %v3103_v26 = vadd.f32 1.0, %v2548_v20 }
 0x1b8   :  { %v481_v32 = vsel %vm480_vm9, %v2542_v58, %v477_v22  ;;  %v489_v33 = vmul.f32 %v2550_v25, %v3095_v59  ;;  %v522_v39 = vadd.f32 %v2546_v2, %v521_v24  ;;  %vm494_vm13 = vweird.f32 %v2550_v25  ;;  %v262_v22 = vpop.f32.mrf.mxu1 }
 0x1b9   :  { %v3106_v34 = vpop.eup %2551  ;;  %2553 = vrcp.f32 %v3103_v26  ;;  %v486_v36 = vsel %vm483_vm10, %v485_v30, %v481_v32  ;;  %v530_v58 = vor.u32 1.1754944e-38, %v529_v44  ;;  %vm495_vm3 = vmor %vm493_vm15, %vm494_vm13  ;;  %v514_v11 = vand.u32 2147483648, %v3103_v26 }
 0x1ba   :  { %604 = vrot.lane.b32.xlu0 %v486_v36, %s2854_s1  ;;  %v490_v38 = vsub.f32 1.0, %v489_v33  ;;  %v534_v41 = vmul.f32 %v3106_v34, %v3098_v4  ;;  %v526_v52 = vsel %vm3117_vm14, %v2546_v2, %v522_v39  ;;  %vm539_vm6 = vweird.f32 %v3106_v34 }
 0x1bb   :  { %v531_v2 = vsel %vm528_vm4, %v530_v58, %v526_v52  ;;  %vm3141_vm9 = vmor %vm538_vm7, %vm539_vm6  ;;  %vm508_vm10 = vweird.f32 %v3103_v26  ;;  %v3151_v36 = vadd.f32 %v3044_v54, %v262_v22  ;;  %v515_v37 = vor.u32 1.1754944e-38, %v514_v11 }
 0x1bc   :  { %v491_v46 = vmul.f32 %v2550_v25, %v490_v38  ;;  %v535_v49 = vsub.f32 1.0, %v534_v41  ;;  %v545_v39 = vor.u32 1.1754944e-38, %v544_v19  ;;  %vm543_vm13 = vcmp.eq.f32.partialorder %v542_v14, 8.507059e+37 }
 0x1be   :  { %v492_v53 = vadd.f32 %v2550_v25, %v491_v46  ;;  %v536_v56 = vmul.f32 %v3106_v34, %v535_v49 }
 0x1bf   :  { %v2554_v43 = vpop.eup %2553 }
 0x1c0   :  { %v496_v63 = vsel %vm495_vm3, %v2550_v25, %v492_v53  ;;  %v504_v0 = vmul.f32 %v2554_v43, %v3103_v26  ;;  %v537_v10 = vadd.f32 %v3106_v34, %v536_v56  ;;  %vm509_vm8 = vweird.f32 %v2554_v43  ;;  %v265_v30 = vpop.f32.mrf.mxu1 }
 0x1c1   :  { %v381_v1 = vpop.permute.xlu0 %380  ;;  %v501_v8 = vsel %vm498_vm5, %v500_v61, %v496_v63  ;;  %v512_v25 = vand.u32 2147483647, %v3103_v26  ;;  %vm510_vm11 = vmor %vm508_vm10, %vm509_vm8 }
 0x1c2   :  { %v401_v9 = vadd.f32 %v381_v1, %v356_v5  ;;  %610 = vrot.lane.b32.xlu0 %v531_v2, %s2854_s1  ;;  %606 = vrot.lane.b32.xlu1 %v501_v8, %s2854_s1  ;;  %v505_v59 = vsub.f32 1.0, %v504_v0  ;;  %v541_v4 = vsel %vm3141_vm9, %v3106_v34, %v537_v10 }
 0x1c3   :  { %vm513_vm12 = vcmp.eq.f32.partialorder %v512_v25, 8.507059e+37  ;;  %v546_v45 = vsel %vm543_vm13, %v545_v39, %v541_v4  ;;  %v2507_v25 = vld [vmem:[%s3681_s7] sm:$0xff]  ;;  %vm787_vm13 = vcmask 259072  }
 0x1c4   :  { %v3138_v20 = vadd.f32 %v401_v9, %v3126_v57  ;;  %v506_v24 = vmul.f32 %v2554_v43, %v505_v59  ;;  %673 = vmatpush.bf16.msra.mxu3 %v2507_v25 }
 0x1c6   :  { %v2373_v32 = vmul.f32 -1.442695, %v3138_v20  ;;  %v507_v33 = vadd.f32 %v2554_v43, %v506_v24 }
 0x1c8   :  { %2555 = vpow2.f32 %v2373_v32  ;;  %v511_v38 = vsel %vm510_vm11, %v2554_v43, %v507_v33 }
 0x1c9   :  { %v383_v41 = vpop.permute.xlu1 %382  ;;  %v516_v44 = vsel %vm513_vm12, %v515_v37, %v511_v38 }
 0x1ca   :  { %v402_v46 = vadd.f32 %v383_v41, %v357_v42  ;;  %608 = vrot.lane.b32.xlu2 %v516_v44, %s2854_s1  ;;  %612 = vrot.lane.b32.xlu1 %v546_v45, %s2854_s1  ;;  %v267_v42 = vpop.f32.mrf.mxu1 }
 0x1cc   :  { %v3156_v26 = vadd.f32 %v402_v46, %v3151_v36 }
 0x1ce   :  { %v2556_v34 = vpop.eup %2555  ;;  %v2374_v47 = vmul.f32 -1.442695, %v3156_v26 }
 0x1cf   :  { %v455_v49 = vadd.f32 1.0, %v2556_v34 }
 0x1d0   :  { %2557 = vpow2.f32 %v2374_v47 }
 0x1d1   :  { %2559 = vrcp.f32 %v455_v49  ;;  %v559_v58 = vand.u32 2147483648, %v455_v49  ;;  %v557_v63 = vand.u32 2147483647, %v455_v49  ;;  %vm553_vm15 = vweird.f32 %v455_v49 }
 0x1d2   :  { %384 = vrot.lane.b32.xlu1 %v3040_v48, %s2853_s16 }
 0x1d3   :  { %v560_v5 = vor.u32 1.1754944e-38, %v559_v58  ;;  %vm558_vm4 = vcmp.eq.f32.partialorder %v557_v63, 8.507059e+37 }
 0x1d6   :  { %v2558_v51 = vpop.eup %2557 }
 0x1d7   :  { %v2560_v52 = vpop.eup %2559  ;;  %v456_v53 = vadd.f32 1.0, %v2558_v51 }
 0x1d8   :  { %v549_v56 = vmul.f32 %v2560_v52, %v455_v49  ;;  %vm554_vm14 = vweird.f32 %v2560_v52 }
 0x1d9   :  { %2561 = vrcp.f32 %v456_v53  ;;  %vm555_vm3 = vmor %vm553_vm15, %vm554_vm14  ;;  %v574_v59 = vand.u32 2147483648, %v456_v53  ;;  %v572_v11 = vand.u32 2147483647, %v456_v53  ;;  %vm568_vm6 = vweird.f32 %v456_v53 }
 0x1da   :  { %v550_v43 = vsub.f32 1.0, %v549_v56  ;;  %2563 = vtanh.f32 %v3050_v60 }
 0x1db   :  { %v575_v19 = vor.u32 1.1754944e-38, %v574_v59  ;;  %vm573_vm8 = vcmp.eq.f32.partialorder %v572_v11, 8.507059e+37  ;;  %2565 = vtanh.f32 %v3060_v6 }
 0x1dc   :  { %v551_v61 = vmul.f32 %v2560_v52, %v550_v43  ;;  %2567 = vtanh.f32 %v3074_v27  ;;  %v3175_v43 = vadd.f32 %v3044_v54, %v265_v30 }
 0x1dd   :  { %2569 = vtanh.f32 %v3092_v50 }
 0x1de   :  { %v552_v0 = vadd.f32 %v2560_v52, %v551_v61  ;;  %2571 = vtanh.f32 %v3063_v7  ;;  %v358_v61 = vld [vmem:[#allocation2 + $0x40] sm:$0xff] }
 0x1df   :  { %v2562_v1 = vpop.eup %2561  ;;  %2573 = vtanh.f32 %v3077_v28  ;;  %v2508_v28 = vld [vmem:[%s3678_s4 + $0x8] sm:$0xff] }
 0x1e0   :  { %v556_v2 = vsel %vm555_vm3, %v2560_v52, %v552_v0  ;;  %v564_v8 = vmul.f32 %v2562_v1, %v456_v53  ;;  %vm569_vm5 = vweird.f32 %v2562_v1  ;;  %v2564_v33 = vpop.eup %2563  ;;  %753 = vmatpush.bf16.msrb.mxu0 %v2508_v28 }
 0x1e1   :  { %v561_v9 = vsel %vm558_vm4, %v560_v5, %v556_v2  ;;  %vm570_vm7 = vmor %vm568_vm6, %vm569_vm5  ;;  %v2566_v4 = vpop.eup %2565 }
 0x1e2   :  { %614 = vrot.lane.b32.xlu2 %v561_v9, %s2854_s1  ;;  %v565_v48 = vsub.f32 1.0, %v564_v8  ;;  %v2568_v45 = vpop.eup %2567 }
 0x1e3   :  { %v2570_v60 = vpop.eup %2569 }
 0x1e4   :  { %v566_v10 = vmul.f32 %v2562_v1, %v565_v48  ;;  %v2572_v49 = vpop.eup %2571 }
 0x1e5   :  { %v2574_v51 = vpop.eup %2573 }
 0x1e6   :  { %v567_v14 = vadd.f32 %v2562_v1, %v566_v10 }
 0x1e8   :  { %v571_v22 = vsel %vm570_vm7, %v2562_v1, %v567_v14 }
 0x1e9   :  { %v576_v24 = vsel %vm573_vm8, %v575_v19, %v571_v22 }
 0x1ea   :  { %616 = vrot.lane.b32.xlu0 %v576_v24, %s2854_s1 }
 0x20c   :  { %v603_v32 = vpop.permute.xlu2 %602 }
 0x20d   :  { %v629_v39 = vmul.f32 %v2564_v33, %v603_v32 }
 0x224   :  { %v609_v44 = vpop.permute.xlu2 %608 }
 0x225   :  { %v632_v6 = vmul.f32 %v2570_v60, %v609_v44 }
 0x22c   :  { %v605_v37 = vpop.permute.xlu0 %604 }
 0x22d   :  { %v630_v38 = vmul.f32 %v2566_v4, %v605_v37 }
 0x22f   :  { %v638_v41 = vpack.c.bf16 %v630_v38, %v629_v39 }
 0x231   :  { %2380 = vmatmul.msk.bf16.vlgmr.msra.gmra.mxu3 %vm137_vm0, %v638_v41 }
 0x234   :  { %v607_v46 = vpop.permute.xlu1 %606  ;;  %v611_v27 = vpop.permute.xlu0 %610 }
 0x235   :  { %v631_v34 = vmul.f32 %v2568_v45, %v607_v46  ;;  %v633_v50 = vmul.f32 %v2572_v49, %v611_v27 }
 0x237   :  { %v639_v47 = vpack.c.bf16 %v632_v6, %v631_v34 }
 0x23c   :  { %v613_v52 = vpop.permute.xlu1 %612  ;;  %v615_v2 = vpop.permute.xlu2 %614 }
 0x23d   :  { %v634_v53 = vmul.f32 %v2574_v51, %v613_v52 }
 0x23f   :  { %v640_v56 = vpack.c.bf16 %v634_v53, %v633_v50 }
 0x241   :  { %2381 = vmatmul.msk.bf16.gmra.mxu3 %vm137_vm0, %v639_v47 }
 0x244   :  { %v385_v58 = vpop.permute.xlu1 %384 }
 0x245   :  { %v403_v7 = vadd.f32 %v385_v58, %v358_v61 }
 0x247   :  { %v412_v63 = vadd.f32 %v403_v7, %v3175_v43 }
 0x249   :  { %v2375_v0 = vmul.f32 -1.442695, %v412_v63 }
 0x24b   :  { %2575 = vpow2.f32 %v2375_v0 }
 0x251   :  { %v2576_v1 = vpop.eup %2575  ;;  %2382 = vmatmul.msk.bf16.gmra.mxu3 %vm137_vm0, %v640_v56 }
 0x252   :  { %v457_v5 = vadd.f32 1.0, %v2576_v1 }
 0x254   :  { %2577 = vrcp.f32 %v457_v5  ;;  %v589_v19 = vand.u32 2147483648, %v457_v5  ;;  %v587_v25 = vand.u32 2147483647, %v457_v5  ;;  %vm583_vm10 = vweird.f32 %v457_v5 }
 0x255   :  { %2579 = vtanh.f32 %v3138_v20 }
 0x256   :  { %2581 = vtanh.f32 %v3156_v26  ;;  %v590_v20 = vor.u32 1.1754944e-38, %v589_v19  ;;  %vm588_vm12 = vcmp.eq.f32.partialorder %v587_v25, 8.507059e+37 }
 0x257   :  { %2583 = vtanh.f32 %v412_v63 }
 0x25a   :  { %v2578_v54 = vpop.eup %2577 }
 0x25b   :  { %v2580_v8 = vpop.eup %2579  ;;  %v579_v9 = vmul.f32 %v2578_v54, %v457_v5  ;;  %vm584_vm9 = vweird.f32 %v2578_v54 }
 0x25c   :  { %v2582_v48 = vpop.eup %2581  ;;  %v617_v59 = vpop.permute.xlu0 %616  ;;  %v635_v10 = vmul.f32 %v2580_v8, %v615_v2  ;;  %vm585_vm11 = vmor %vm583_vm10, %vm584_vm9 }
 0x25d   :  { %v636_v11 = vmul.f32 %v2582_v48, %v617_v59  ;;  %v580_v14 = vsub.f32 1.0, %v579_v9  ;;  %v2584_v38 = vpop.eup %2583 }
 0x25f   :  { %v641_v22 = vpack.c.bf16 %v636_v11, %v635_v10  ;;  %v581_v24 = vmul.f32 %v2578_v54, %v580_v14 }
 0x261   :  { %2383 = vmatmul.msk.bf16.gmra.mxu3 %vm137_vm0, %v641_v22  ;;  %v582_v30 = vadd.f32 %v2578_v54, %v581_v24 }
 0x263   :  { %v586_v26 = vsel %vm585_vm11, %v2578_v54, %v582_v30 }
 0x264   :  { %v591_v32 = vsel %vm588_vm12, %v590_v20, %v586_v26 }
 0x265   :  { %618 = vrot.lane.b32.xlu2 %v591_v32, %s2854_s1 }
 0x26d   :  { %852 = vrot.lane.b32.xlu2 %v3047_v55, %s2853_s16 }
 0x2b4   :  { %v3188_v33 = vpop.f32.mrf.mxu3 }
 0x2b5   :  { %v3194_v37 = vadd.f32 %v3188_v33, %v2963_v12 }
 0x2bc   :  { %v3190_v4 = vpop.f32.mrf.mxu3 }
 0x2bd   :  { %v3198_v39 = vadd.f32 %v3190_v4, %v2965_v13 }
 0x2bf   :  { %v717_v41 = vpack.c.bf16 %v3198_v39, %v3194_v37  ;;  %v619_v42 = vpop.permute.xlu2 %618 }
 0x2c0   :  { %v637_v44 = vmul.f32 %v2584_v38, %v619_v42 }
 0x2c1   :  { %2391 = vmatmul.msk.bf16.vlgmr.msrb.gmra.mxu0 %vm137_vm0, %v717_v41 }
 0x2c2   :  { %v642_v45 = vpack.c.bf16 %v637_v44, %v637_v44 }
 0x2c4   :  { %v3203_v60 = vpop.f32.mrf.mxu3  ;;  %2384 = vmatmul.msk.bf16.gmra.mxu3 %vm137_vm0, %v642_v45 }
 0x2c5   :  { %v3210_v12 = vadd.f32 %v3203_v60, %v2970_v16 }
 0x2c7   :  { %v853_v2 = vpop.permute.xlu2 %852 }
 0x2cc   :  { %v3206_v46 = vpop.f32.mrf.mxu3 }
 0x2cd   :  { %v3214_v13 = vadd.f32 %v3206_v46, %v2972_v18 }
 0x2cf   :  { %v718_v6 = vpack.c.bf16 %v3214_v13, %v3210_v12 }
 0x2d1   :  { %2392 = vmatmul.msk.bf16.gmra.mxu0 %vm137_vm0, %v718_v6 }
 0x2d4   :  { %v3219_v34 = vpop.f32.mrf.mxu3 }
 0x2d5   :  { %v3225_v27 = vadd.f32 %v3219_v34, %v2977_v21 }
 0x2dc   :  { %v3221_v47 = vpop.f32.mrf.mxu3 }
 0x2dd   :  { %v3229_v16 = vadd.f32 %v3221_v47, %v2979_v23 }
 0x2df   :  { %v719_v18 = vpack.c.bf16 %v3229_v16, %v3225_v27 }
 0x2e1   :  { %2393 = vmatmul.msk.bf16.gmra.mxu0 %vm137_vm0, %v719_v18 }
 0x2e4   :  { %v3234_v49 = vpop.f32.mrf.mxu3 }
 0x2e5   :  { %v3240_v52 = vadd.f32 %v3234_v49, %v2995_v29 }
 0x2ec   :  { %v3236_v51 = vpop.f32.mrf.mxu3 }
 0x2ed   :  { %v3244_v21 = vadd.f32 %v3236_v51, %v2999_v31 }
 0x2ef   :  { %v720_v23 = vpack.c.bf16 %v3244_v21, %v3240_v52 }
 0x2f1   :  { %2394 = vmatmul.msk.bf16.gmra.mxu0 %vm137_vm0, %v720_v23 }
 0x33e   :  { %v755_v50 = vpop.f32.mrf.mxu0 }
 0x33f   :  { %779 = vst.msk [vmem:[#allocation2 + $0x2] sm:$0xff] %vm269_vm1, %v755_v50  ;;  %807 = vrot.lane.b32.xlu0 %v755_v50, %s2853_s16 }
 0x346   :  { %v757_v53 = vpop.f32.mrf.mxu0  ;;  %v789_v1 = vld [vmem:[#allocation2] sm:$0xff] }
 0x347   :  { %780 = vst.msk [vmem:[#allocation2 + $0xa] sm:$0xff] %vm269_vm1, %v757_v53  ;;  %854 = vrot.lane.b32.xlu0 %v3057_v3, %s2853_s16  ;;  %809 = vrot.lane.b32.xlu1 %v757_v53, %s2853_s16  ;;  %v3255_v29 = vpop.f32.mrf.mxu3 }
 0x348   :  { %v3259_v31 = vadd.f32 %v3255_v29, %v3011_v35 }
 0x34a   :  { %v721_v56 = vpack.c.bf16 %v3259_v31, %v3259_v31 }
 0x34c   :  { %2395 = vmatmul.msk.bf16.gmra.mxu0 %vm137_vm0, %v721_v56 }
 0x34e   :  { %v760_v58 = vpop.f32.mrf.mxu0  ;;  %v790_v59 = vld [vmem:[#allocation2 + $0x8] sm:$0xff] }
 0x34f   :  { %781 = vst.msk [vmem:[#allocation2 + $0x12] sm:$0xff] %vm269_vm1, %v760_v58  ;;  %856 = vrot.lane.b32.xlu0 %v3068_v15, %s2853_s16  ;;  %811 = vrot.lane.b32.xlu1 %v760_v58, %s2853_s16  ;;  %v697_v61 = vpop.f32.mrf.mxu3 }
 0x356   :  { %v762_v7 = vpop.f32.mrf.mxu0  ;;  %v791_v25 = vld [vmem:[#allocation2 + $0x10] sm:$0xff] }
 0x357   :  { %782 = vst.msk [vmem:[#allocation2 + $0x1a] sm:$0xff] %vm269_vm1, %v762_v7  ;;  %858 = vrot.lane.b32.xlu1 %v3085_v40, %s2853_s16  ;;  %813 = vrot.lane.b32.xlu2 %v762_v7, %s2853_s16 }
 0x35e   :  { %v765_v35 = vpop.f32.mrf.mxu0  ;;  %v792_v45 = vld [vmem:[#allocation2 + $0x18] sm:$0xff] }
 0x35f   :  { %783 = vst.msk [vmem:[#allocation2 + $0x22] sm:$0xff] %vm269_vm1, %v765_v35  ;;  %860 = vrot.lane.b32.xlu1 %v3054_v62, %s2853_s16  ;;  %815 = vrot.lane.b32.xlu2 %v765_v35, %s2853_s16 }
 0x366   :  { %v767_v63 = vpop.f32.mrf.mxu0 }
 0x367   :  { %784 = vst.msk [vmem:[#allocation2 + $0x2a] sm:$0xff] %vm269_vm1, %v767_v63  ;;  %817 = vrot.lane.b32.xlu0 %v767_v63, %s2853_s16  ;;  %862 = vrot.lane.b32.xlu2 %v3071_v17, %s2853_s16 }
 0x36e   :  { %v770_v0 = vpop.f32.mrf.mxu0 }
 0x36f   :  { %785 = vst.msk [vmem:[#allocation2 + $0x32] sm:$0xff] %vm269_vm1, %v770_v0  ;;  %819 = vrot.lane.b32.xlu0 %v770_v0, %s2853_s16  ;;  %864 = vrot.lane.b32.xlu2 %v3126_v57, %s2853_s16 }
 0x376   :  { %v772_v28 = vpop.f32.mrf.mxu0 }
 0x377   :  { %786 = vst.msk [vmem:[#allocation2 + $0x3a] sm:$0xff] %vm269_vm1, %v772_v28  ;;  %866 = vrot.lane.b32.xlu0 %v3151_v36, %s2853_s16  ;;  %821 = vrot.lane.b32.xlu1 %v772_v28, %s2853_s16 }
 0x3b1   :  { %v808_v5 = vpop.permute.xlu0 %807  ;;  %v814_v26 = vpop.permute.xlu2 %813 }
 0x3b2   :  { %v834_v54 = vadd.f32 %v808_v5, %v789_v1  ;;  %v837_v18 = vadd.f32 %v814_v26, %v792_v45 }
 0x3b4   :  { %v3288_v8 = vadd.f32 %v853_v2, %v834_v54  ;;  %v793_v54 = vld [vmem:[#allocation2 + $0x20] sm:$0xff] }
 0x3b6   :  { %v2396_v9 = vmul.f32 -1.442695, %v3288_v8 }
 0x3b8   :  { %2585 = vpow2.f32 %v2396_v9 }
 0x3b9   :  { %v855_v48 = vpop.permute.xlu0 %854  ;;  %v810_v10 = vpop.permute.xlu1 %809 }
 0x3ba   :  { %v835_v11 = vadd.f32 %v810_v10, %v790_v59  ;;  %v816_v0 = vpop.permute.xlu2 %815 }
 0x3bc   :  { %v3291_v14 = vadd.f32 %v855_v48, %v835_v11  ;;  %v838_v48 = vadd.f32 %v816_v0, %v793_v54 }
 0x3be   :  { %v2586_v19 = vpop.eup %2585  ;;  %v2397_v22 = vmul.f32 -1.442695, %v3291_v14 }
 0x3bf   :  { %v924_v24 = vadd.f32 1.0, %v2586_v19 }
 0x3c0   :  { %2587 = vpow2.f32 %v2397_v22 }
 0x3c1   :  { %2589 = vrcp.f32 %v924_v24  ;;  %v812_v30 = vpop.permute.xlu1 %811  ;;  %v857_v32 = vpop.permute.xlu0 %856  ;;  %v944_v61 = vand.u32 2147483648, %v924_v24  ;;  %v942_v63 = vand.u32 2147483647, %v924_v24  ;;  %vm938_vm15 = vweird.f32 %v924_v24 }
 0x3c2   :  { %v836_v20 = vadd.f32 %v812_v30, %v791_v25 }
 0x3c3   :  { %v945_v9 = vor.u32 1.1754944e-38, %v944_v61  ;;  %vm943_vm4 = vcmp.eq.f32.partialorder %v942_v63, 8.507059e+37  ;;  %v794_v61 = vld [vmem:[#allocation2 + $0x28] sm:$0xff] }
 0x3c4   :  { %v3294_v38 = vadd.f32 %v857_v32, %v836_v20  ;;  %v2509_v63 = vld [vmem:[%s3681_s7 + $0x8] sm:$0xff] }
 0x3c5   :  { %1149 = vmatpush.bf16.msrb.mxu1 %v2509_v63 }
 0x3c6   :  { %v2588_v41 = vpop.eup %2587  ;;  %v2398_v42 = vmul.f32 -1.442695, %v3294_v38 }
 0x3c7   :  { %v2590_v44 = vpop.eup %2589  ;;  %v925_v6 = vadd.f32 1.0, %v2588_v41 }
 0x3c8   :  { %2591 = vpow2.f32 %v2398_v42  ;;  %v934_v23 = vmul.f32 %v2590_v44, %v924_v24  ;;  %vm939_vm14 = vweird.f32 %v2590_v44 }
 0x3c9   :  { %2593 = vrcp.f32 %v925_v6  ;;  %v859_v50 = vpop.permute.xlu1 %858  ;;  %v3297_v53 = vpop.f32.mrf.mxu0  ;;  %vm940_vm3 = vmor %vm938_vm15, %vm939_vm14  ;;  %v959_v20 = vand.u32 2147483648, %v925_v6  ;;  %v957_v41 = vand.u32 2147483647, %v925_v6  ;;  %vm953_vm6 = vweird.f32 %v925_v6 }
 0x3ca   :  { %v3299_v56 = vadd.f32 %v859_v50, %v837_v18  ;;  %788 = vst.msk [vmem:[#allocation2 + $0x42] sm:$0x3f] %vm787_vm13, %v3297_v53  ;;  %v935_v58 = vsub.f32 1.0, %v934_v23 }
 0x3cb   :  { %v960_v18 = vor.u32 1.1754944e-38, %v959_v20  ;;  %vm958_vm8 = vcmp.eq.f32.partialorder %v957_v41, 8.507059e+37 }
 0x3cc   :  { %v2399_v7 = vmul.f32 -1.442695, %v3299_v56  ;;  %v936_v35 = vmul.f32 %v2590_v44, %v935_v58  ;;  %v863_v58 = vpop.permute.xlu2 %862 }
 0x3ce   :  { %v2592_v28 = vpop.eup %2591  ;;  %2595 = vpow2.f32 %v2399_v7  ;;  %v937_v1 = vadd.f32 %v2590_v44, %v936_v35 }
 0x3cf   :  { %v2594_v5 = vpop.eup %2593  ;;  %v926_v2 = vadd.f32 1.0, %v2592_v28 }
 0x3d0   :  { %v941_v59 = vsel %vm940_vm3, %v2590_v44, %v937_v1  ;;  %v949_v10 = vmul.f32 %v2594_v5, %v925_v6  ;;  %vm954_vm5 = vweird.f32 %v2594_v5 }
 0x3d1   :  { %2597 = vrcp.f32 %v926_v2  ;;  %v861_v11 = vpop.permute.xlu1 %860  ;;  %v777_v19 = vpop.f32.mrf.mxu0  ;;  %v946_v22 = vsel %vm943_vm4, %v945_v9, %v941_v59  ;;  %vm955_vm7 = vmor %vm953_vm6, %vm954_vm5  ;;  %v974_v6 = vand.u32 2147483648, %v926_v2  ;;  %v972_v9 = vand.u32 2147483647, %v926_v2 }
 0x3d2   :  { %v3304_v25 = vadd.f32 %v861_v11, %v838_v48  ;;  %1077 = vrot.lane.b32.xlu1 %v946_v22, %s2854_s1  ;;  %v950_v30 = vsub.f32 1.0, %v949_v10  ;;  %vm968_vm10 = vweird.f32 %v926_v2 }
 0x3d3   :  { %v975_v22 = vor.u32 1.1754944e-38, %v974_v6  ;;  %vm973_vm12 = vcmp.eq.f32.partialorder %v972_v9, 8.507059e+37  ;;  %v796_v9 = vld [vmem:[#allocation2 + $0x38] sm:$0xff] }
 0x3d4   :  { %v2596_v24 = vpop.eup %2595  ;;  %v2400_v26 = vmul.f32 -1.442695, %v3304_v25  ;;  %v951_v32 = vmul.f32 %v2594_v5, %v950_v30 }
 0x3d5   :  { %v927_v42 = vadd.f32 1.0, %v2596_v24 }
 0x3d6   :  { %2599 = vpow2.f32 %v2400_v26  ;;  %v952_v44 = vadd.f32 %v2594_v5, %v951_v32  ;;  %v795_v26 = vld [vmem:[#allocation2 + $0x30] sm:$0xff] }
 0x3d7   :  { %v2598_v45 = vpop.eup %2597  ;;  %2601 = vrcp.f32 %v927_v42  ;;  %v989_v41 = vand.u32 2147483648, %v927_v42  ;;  %vm983_vm15 = vweird.f32 %v927_v42 }
 0x3d8   :  { %v956_v23 = vsel %vm955_vm7, %v2594_v5, %v952_v44  ;;  %v964_v50 = vmul.f32 %v2598_v45, %v926_v2  ;;  %vm969_vm9 = vweird.f32 %v2598_v45 }
 0x3d9   :  { %v818_v7 = vpop.permute.xlu0 %817  ;;  %v961_v35 = vsel %vm958_vm8, %v960_v18, %v956_v23  ;;  %vm970_vm11 = vmor %vm968_vm10, %vm969_vm9  ;;  %v987_v23 = vand.u32 2147483647, %v927_v42 }
 0x3da   :  { %v839_v0 = vadd.f32 %v818_v7, %v794_v61  ;;  %1079 = vrot.lane.b32.xlu2 %v961_v35, %s2854_s1  ;;  %v965_v28 = vsub.f32 1.0, %v964_v50  ;;  %v865_v50 = vpop.permute.xlu2 %864 }
 0x3db   :  { %vm988_vm4 = vcmp.eq.f32.partialorder %v987_v23, 8.507059e+37 }
 0x3dc   :  { %v2600_v1 = vpop.eup %2599  ;;  %v3312_v54 = vadd.f32 %v863_v58, %v839_v0  ;;  %v966_v5 = vmul.f32 %v2598_v45, %v965_v28 }
 0x3dd   :  { %v2602_v48 = vpop.eup %2601  ;;  %v928_v59 = vadd.f32 1.0, %v2600_v1 }
 0x3de   :  { %v2401_v10 = vmul.f32 -1.442695, %v3312_v54  ;;  %v967_v11 = vadd.f32 %v2598_v45, %v966_v5  ;;  %v979_v19 = vmul.f32 %v2602_v48, %v927_v42  ;;  %vm984_vm14 = vweird.f32 %v2602_v48 }
 0x3df   :  { %2603 = vrcp.f32 %v928_v59  ;;  %vm985_vm3 = vmor %vm983_vm15, %vm984_vm14  ;;  %vm998_vm6 = vweird.f32 %v928_v59 }
 0x3e0   :  { %2605 = vpow2.f32 %v2401_v10  ;;  %v971_v30 = vsel %vm970_vm11, %v2598_v45, %v967_v11  ;;  %v980_v20 = vsub.f32 1.0, %v979_v19  ;;  %v990_v45 = vor.u32 1.1754944e-38, %v989_v41 }
 0x3e1   :  { %v820_v24 = vpop.permute.xlu0 %819  ;;  %v976_v32 = vsel %vm973_vm12, %v975_v22, %v971_v30  ;;  %v1004_v10 = vand.u32 2147483648, %v928_v59  ;;  %v1002_v19 = vand.u32 2147483647, %v928_v59 }
 0x3e2   :  { %v840_v44 = vadd.f32 %v820_v24, %v795_v26  ;;  %1081 = vrot.lane.b32.xlu0 %v976_v32, %s2854_s1  ;;  %v981_v18 = vmul.f32 %v2602_v48, %v980_v20 }
 0x3e3   :  { %v1005_v20 = vor.u32 1.1754944e-38, %v1004_v10  ;;  %vm1003_vm8 = vcmp.eq.f32.partialorder %v1002_v19, 8.507059e+37 }
 0x3e4   :  { %v3316_v2 = vadd.f32 %v865_v50, %v840_v44  ;;  %v982_v58 = vadd.f32 %v2602_v48, %v981_v18 }
 0x3e5   :  { %v2604_v61 = vpop.eup %2603 }
 0x3e6   :  { %v2606_v7 = vpop.eup %2605  ;;  %v2402_v35 = vmul.f32 -1.442695, %v3316_v2  ;;  %v986_v63 = vsel %vm985_vm3, %v2602_v48, %v982_v58  ;;  %v994_v0 = vmul.f32 %v2604_v61, %v928_v59  ;;  %vm999_vm5 = vweird.f32 %v2604_v61 }
 0x3e7   :  { %v929_v28 = vadd.f32 1.0, %v2606_v7  ;;  %v991_v6 = vsel %vm988_vm4, %v990_v45, %v986_v63  ;;  %vm1000_vm7 = vmor %vm998_vm6, %vm999_vm5 }
 0x3e8   :  { %2607 = vpow2.f32 %v2402_v35  ;;  %1083 = vrot.lane.b32.xlu1 %v991_v6, %s2854_s1  ;;  %v995_v1 = vsub.f32 1.0, %v994_v0 }
 0x3e9   :  { %2609 = vrcp.f32 %v929_v28  ;;  %v822_v5 = vpop.permute.xlu1 %821  ;;  %v867_v22 = vpop.permute.xlu0 %866  ;;  %v1019_v59 = vand.u32 2147483648, %v929_v28  ;;  %v1017_v45 = vand.u32 2147483647, %v929_v28  ;;  %vm1013_vm10 = vweird.f32 %v929_v28 }
 0x3ea   :  { %v841_v42 = vadd.f32 %v822_v5, %v796_v9  ;;  %v996_v11 = vmul.f32 %v2604_v61, %v995_v1 }
 0x3eb   :  { %v1020_v0 = vor.u32 1.1754944e-38, %v1019_v59  ;;  %vm1018_vm12 = vcmp.eq.f32.partialorder %v1017_v45, 8.507059e+37 }
 0x3ec   :  { %v3320_v30 = vadd.f32 %v867_v22, %v841_v42  ;;  %v997_v48 = vadd.f32 %v2604_v61, %v996_v11 }
 0x3ee   :  { %v2608_v24 = vpop.eup %2607  ;;  %v2403_v26 = vmul.f32 -1.442695, %v3320_v30  ;;  %v1001_v32 = vsel %vm1000_vm7, %v2604_v61, %v997_v48 }
 0x3ef   :  { %v2610_v41 = vpop.eup %2609  ;;  %v930_v44 = vadd.f32 1.0, %v2608_v24  ;;  %v1006_v18 = vsel %vm1003_vm8, %v1005_v20, %v1001_v32 }
 0x3f0   :  { %2611 = vpow2.f32 %v2403_v26  ;;  %1085 = vrot.lane.b32.xlu2 %v1006_v18, %s2854_s1  ;;  %823 = vrot.lane.b32.xlu1 %v3297_v53, %s2853_s16  ;;  %v1009_v23 = vmul.f32 %v2610_v41, %v929_v28  ;;  %vm1014_vm9 = vweird.f32 %v2610_v41 }
 0x3f1   :  { %2613 = vrcp.f32 %v930_v44  ;;  %vm1015_vm11 = vmor %vm1013_vm10, %vm1014_vm9  ;;  %v1034_v9 = vand.u32 2147483648, %v930_v44  ;;  %v1032_v42 = vand.u32 2147483647, %v930_v44  ;;  %vm1028_vm15 = vweird.f32 %v930_v44 }
 0x3f2   :  { %v1010_v50 = vsub.f32 1.0, %v1009_v23 }
 0x3f3   :  { %v1035_v19 = vor.u32 1.1754944e-38, %v1034_v9  ;;  %vm1033_vm4 = vcmp.eq.f32.partialorder %v1032_v42, 8.507059e+37 }
 0x3f4   :  { %v1011_v58 = vmul.f32 %v2610_v41, %v1010_v50 }
 0x3f6   :  { %v2612_v7 = vpop.eup %2611  ;;  %v1012_v35 = vadd.f32 %v2610_v41, %v1011_v58 }
 0x3f7   :  { %v2614_v61 = vpop.eup %2613  ;;  %v931_v63 = vadd.f32 1.0, %v2612_v7 }
 0x3f8   :  { %868 = vrot.lane.b32.xlu2 %v3175_v43, %s2853_s16  ;;  %v1016_v6 = vsel %vm1015_vm11, %v2610_v41, %v1012_v35  ;;  %v1024_v53 = vmul.f32 %v2614_v61, %v930_v44  ;;  %vm1029_vm14 = vweird.f32 %v2614_v61 }
 0x3f9   :  { %2615 = vrcp.f32 %v931_v63  ;;  %v1021_v1 = vsel %vm1018_vm12, %v1020_v0, %v1016_v6  ;;  %vm1030_vm3 = vmor %vm1028_vm15, %vm1029_vm14  ;;  %v1049_v26 = vand.u32 2147483648, %v931_v63  ;;  %v1047_v41 = vand.u32 2147483647, %v931_v63 }
 0x3fa   :  { %1087 = vrot.lane.b32.xlu0 %v1021_v1, %s2854_s1  ;;  %v1025_v5 = vsub.f32 1.0, %v1024_v53  ;;  %vm1043_vm6 = vweird.f32 %v931_v63  ;;  %2617 = vtanh.f32 %v3288_v8 }
 0x3fb   :  { %v1050_v23 = vor.u32 1.1754944e-38, %v1049_v26  ;;  %vm1048_vm8 = vcmp.eq.f32.partialorder %v1047_v41, 8.507059e+37  ;;  %2619 = vtanh.f32 %v3291_v14 }
 0x3fc   :  { %v1026_v10 = vmul.f32 %v2614_v61, %v1025_v5  ;;  %2621 = vtanh.f32 %v3294_v38 }
 0x3fd   :  { %2623 = vtanh.f32 %v3299_v56 }
 0x3fe   :  { %v1027_v28 = vadd.f32 %v2614_v61, %v1026_v10  ;;  %v2510_v10 = vld [vmem:[%s3678_s4 + $0x10] sm:$0xff]  ;;  %2625 = vtanh.f32 %v3304_v25 }
 0x3ff   :  { %v2616_v11 = vpop.eup %2615  ;;  %1229 = vmatpush.bf16.msrb.mxu2 %v2510_v10  ;;  %2627 = vtanh.f32 %v3312_v54 }
 0x400   :  { %v1031_v22 = vsel %vm1030_vm3, %v2614_v61, %v1027_v28  ;;  %v1039_v48 = vmul.f32 %v2616_v11, %v931_v63  ;;  %vm1044_vm5 = vweird.f32 %v2616_v11  ;;  %v2618_v58 = vpop.eup %2617  ;;  %v797_v28 = vld [vmem:[#allocation2 + $0x40] sm:$0xff] }
 0x401   :  { %v1036_v20 = vsel %vm1033_vm4, %v1035_v19, %v1031_v22  ;;  %vm1045_vm7 = vmor %vm1043_vm6, %vm1044_vm5  ;;  %v2620_v45 = vpop.eup %2619 }
 0x402   :  { %1089 = vrot.lane.b32.xlu0 %v1036_v20, %s2854_s1  ;;  %v1040_v24 = vsub.f32 1.0, %v1039_v48  ;;  %v2622_v6 = vpop.eup %2621 }
 0x403   :  { %v2624_v53 = vpop.eup %2623 }
 0x404   :  { %v1041_v32 = vmul.f32 %v2616_v11, %v1040_v24  ;;  %v2626_v22 = vpop.eup %2625 }
 0x405   :  { %v2628_v48 = vpop.eup %2627 }
 0x406   :  { %v1042_v18 = vadd.f32 %v2616_v11, %v1041_v32 }
 0x408   :  { %v1046_v50 = vsel %vm1045_vm7, %v2616_v11, %v1042_v18 }
 0x409   :  { %v1051_v44 = vsel %vm1048_vm8, %v1050_v23, %v1046_v50 }
 0x40a   :  { %1091 = vrot.lane.b32.xlu1 %v1051_v44, %s2854_s1 }
 0x434   :  { %v1080_v59 = vpop.permute.xlu2 %1079 }
 0x435   :  { %v1105_v35 = vmul.f32 %v2620_v45, %v1080_v59 }
 0x444   :  { %v1078_v7 = vpop.permute.xlu1 %1077 }
 0x445   :  { %v1104_v61 = vmul.f32 %v2618_v58, %v1078_v7 }
 0x447   :  { %v1113_v0 = vpack.c.bf16 %v1105_v35, %v1104_v61 }
 0x449   :  { %2411 = vmatmul.msk.bf16.vlgmr.msrb.gmra.mxu1 %vm137_vm0, %v1113_v0 }
 0x44a   :  { %v1086_v1 = vpop.permute.xlu2 %1085 }
 0x44b   :  { %v1108_v24 = vmul.f32 %v2626_v22, %v1086_v1 }
 0x452   :  { %v869_v38 = vpop.permute.xlu2 %868 }
 0x454   :  { %v1082_v63 = vpop.permute.xlu0 %1081 }
 0x455   :  { %v1106_v5 = vmul.f32 %v2622_v6, %v1082_v63 }
 0x45a   :  { %v1084_v8 = vpop.permute.xlu1 %1083 }
 0x45b   :  { %v1107_v14 = vmul.f32 %v2624_v53, %v1084_v8 }
 0x45d   :  { %v1114_v9 = vpack.c.bf16 %v1107_v14, %v1106_v5 }
 0x45f   :  { %2412 = vmatmul.msk.bf16.gmra.mxu1 %vm137_vm0, %v1114_v9 }
 0x462   :  { %v824_v42 = vpop.permute.xlu1 %823 }
 0x463   :  { %v842_v11 = vadd.f32 %v824_v42, %v797_v28 }
 0x465   :  { %v887_v56 = vadd.f32 %v869_v38, %v842_v11 }
 0x467   :  { %v2404_v19 = vmul.f32 -1.442695, %v887_v56 }
 0x469   :  { %2629 = vpow2.f32 %v2404_v19 }
 0x46c   :  { %v1088_v20 = vpop.permute.xlu0 %1087 }
 0x46d   :  { %v1109_v26 = vmul.f32 %v2628_v48, %v1088_v20 }
 0x46f   :  { %v2630_v32 = vpop.eup %2629  ;;  %v1115_v41 = vpack.c.bf16 %v1109_v26, %v1108_v24 }
 0x470   :  { %v932_v18 = vadd.f32 1.0, %v2630_v32 }
 0x471   :  { %2413 = vmatmul.msk.bf16.gmra.mxu1 %vm137_vm0, %v1115_v41 }
 0x472   :  { %2631 = vrcp.f32 %v932_v18  ;;  %v1062_v45 = vand.u32 2147483647, %v932_v18  ;;  %v1064_v7 = vand.u32 2147483648, %v932_v18  ;;  %vm1058_vm10 = vweird.f32 %v932_v18 }
 0x473   :  { %2633 = vtanh.f32 %v3316_v2 }
 0x474   :  { %2635 = vtanh.f32 %v3320_v30  ;;  %v1090_v54 = vpop.permute.xlu0 %1089  ;;  %v1065_v2 = vor.u32 1.1754944e-38, %v1064_v7  ;;  %vm1063_vm12 = vcmp.eq.f32.partialorder %v1062_v45, 8.507059e+37 }
 0x475   :  { %2637 = vtanh.f32 %v887_v56 }
 0x478   :  { %v2632_v25 = vpop.eup %2631 }
 0x479   :  { %v1054_v23 = vmul.f32 %v2632_v25, %v932_v18  ;;  %v2634_v50 = vpop.eup %2633  ;;  %vm1059_vm9 = vweird.f32 %v2632_v25 }
 0x47a   :  { %v2636_v59 = vpop.eup %2635  ;;  %v1110_v35 = vmul.f32 %v2634_v50, %v1090_v54  ;;  %vm1060_vm11 = vmor %vm1058_vm10, %vm1059_vm9 }
 0x47b   :  { %v1055_v44 = vsub.f32 1.0, %v1054_v23  ;;  %v2638_v42 = vpop.eup %2637 }
 0x47c   :  { %v1092_v58 = vpop.permute.xlu1 %1091 }
 0x47d   :  { %v1111_v61 = vmul.f32 %v2636_v59, %v1092_v58  ;;  %v1056_v0 = vmul.f32 %v2632_v25, %v1055_v44 }
 0x47f   :  { %v1116_v63 = vpack.c.bf16 %v1111_v61, %v1110_v35  ;;  %v1057_v6 = vadd.f32 %v2632_v25, %v1056_v0 }
 0x481   :  { %2414 = vmatmul.msk.bf16.gmra.mxu1 %vm137_vm0, %v1116_v63  ;;  %v1061_v30 = vsel %vm1060_vm11, %v2632_v25, %v1057_v6 }
 0x482   :  { %v1066_v53 = vsel %vm1063_vm12, %v1065_v2, %v1061_v30 }
 0x483   :  { %1093 = vrot.lane.b32.xlu2 %v1066_v53, %s2854_s1 }
 0x48b   :  { %1318 = vrot.lane.b32.xlu2 %v3047_v55, %s2855_s26 }
 0x4c6   :  { %v3349_v1 = vpop.f32.mrf.mxu1 }
 0x4c7   :  { %v3355_v5 = vadd.f32 %v3349_v1, %v3194_v37 }
 0x4ce   :  { %v3351_v8 = vpop.f32.mrf.mxu1 }
 0x4cf   :  { %v3359_v14 = vadd.f32 %v3351_v8, %v3198_v39 }
 0x4d1   :  { %v1193_v9 = vpack.c.bf16 %v3359_v14, %v3355_v5 }
 0x4d3   :  { %2422 = vmatmul.msk.bf16.vlgmr.msrb.gmra.mxu2 %vm137_vm0, %v1193_v9 }
 0x4dc   :  { %v3364_v10 = vpop.f32.mrf.mxu1 }
 0x4dd   :  { %v1094_v28 = vpop.permute.xlu2 %1093  ;;  %v3371_v39 = vadd.f32 %v3364_v10, %v3210_v12 }
 0x4de   :  { %v1112_v11 = vmul.f32 %v2638_v42, %v1094_v28 }
 0x4e0   :  { %v1117_v38 = vpack.c.bf16 %v1112_v11, %v1112_v11 }
 0x4e2   :  { %2415 = vmatmul.msk.bf16.gmra.mxu1 %vm137_vm0, %v1117_v38 }
 0x4e4   :  { %v3367_v37 = vpop.f32.mrf.mxu1 }
 0x4e5   :  { %v3375_v19 = vadd.f32 %v3367_v37, %v3214_v13  ;;  %v1319_v61 = vpop.permute.xlu2 %1318 }
 0x4e7   :  { %v1194_v56 = vpack.c.bf16 %v3375_v19, %v3371_v39 }
 0x4e9   :  { %2423 = vmatmul.msk.bf16.gmra.mxu2 %vm137_vm0, %v1194_v56 }
 0x4ee   :  { %v3380_v22 = vpop.f32.mrf.mxu1 }
 0x4ef   :  { %v3386_v20 = vadd.f32 %v3380_v22, %v3225_v27 }
 0x4f6   :  { %v3382_v48 = vpop.f32.mrf.mxu1 }
 0x4f7   :  { %v3390_v12 = vadd.f32 %v3382_v48, %v3229_v16 }
 0x4f9   :  { %v1195_v13 = vpack.c.bf16 %v3390_v12, %v3386_v20 }
 0x4fb   :  { %2424 = vmatmul.msk.bf16.gmra.mxu2 %vm137_vm0, %v1195_v13 }
 0x4fe   :  { %v3395_v24 = vpop.f32.mrf.mxu1 }
 0x4ff   :  { %v3401_v32 = vadd.f32 %v3395_v24, %v3240_v52 }
 0x506   :  { %v3397_v26 = vpop.f32.mrf.mxu1 }
 0x507   :  { %v3405_v27 = vadd.f32 %v3397_v26, %v3244_v21 }
 0x509   :  { %v1196_v16 = vpack.c.bf16 %v3405_v27, %v3401_v32 }
 0x50b   :  { %2425 = vmatmul.msk.bf16.gmra.mxu2 %vm137_vm0, %v1196_v16 }
 0x556   :  { %v1231_v41 = vpop.f32.mrf.mxu2 }
 0x557   :  { %1255 = vst.msk [vmem:[#allocation2 + $0x1] sm:$0xff] %vm269_vm1, %v1231_v41  ;;  %1282 = vrot.lane.b32.xlu0 %v1231_v41, %s2853_s16 }
 0x55e   :  { %v1233_v18 = vpop.f32.mrf.mxu2  ;;  %v1264_v7 = vld [vmem:[#allocation2] sm:$0xff] }
 0x55f   :  { %1256 = vst.msk [vmem:[#allocation2 + $0x9] sm:$0xff] %vm269_vm1, %v1233_v18  ;;  %v3413_v25 = vpop.f32.mrf.mxu1  ;;  %1320 = vrot.lane.b32.xlu0 %v3057_v3, %s2855_s26  ;;  %1284 = vrot.lane.b32.xlu1 %v1233_v18, %s2853_s16 }
 0x560   :  { %v3420_v52 = vadd.f32 %v3413_v25, %v3259_v31 }
 0x562   :  { %v1197_v21 = vpack.c.bf16 %v3420_v52, %v3420_v52 }
 0x564   :  { %2426 = vmatmul.msk.bf16.gmra.mxu2 %vm137_vm0, %v1197_v21 }
 0x566   :  { %v1265_v2 = vld [vmem:[#allocation2 + $0x8] sm:$0xff] }
 0x567   :  { %v1173_v23 = vpop.f32.mrf.mxu1  ;;  %1322 = vrot.lane.b32.xlu0 %v3068_v15, %s2855_s26 }
 0x56c   :  { %v1236_v54 = vpop.f32.mrf.mxu2 }
 0x56d   :  { %1257 = vst.msk [vmem:[#allocation2 + $0x11] sm:$0xff] %vm269_vm1, %v1236_v54  ;;  %1286 = vrot.lane.b32.xlu1 %v1236_v54, %s2853_s16 }
 0x574   :  { %v1238_v50 = vpop.f32.mrf.mxu2  ;;  %v1266_v41 = vld [vmem:[#allocation2 + $0x10] sm:$0xff] }
 0x575   :  { %1258 = vst.msk [vmem:[#allocation2 + $0x19] sm:$0xff] %vm269_vm1, %v1238_v50  ;;  %1324 = vrot.lane.b32.xlu1 %v3085_v40, %s2855_s26  ;;  %1288 = vrot.lane.b32.xlu2 %v1238_v50, %s2853_s16 }
 0x57d   :  { %1326 = vrot.lane.b32.xlu1 %v3054_v62, %s2855_s26 }
 0x57e   :  { %v1241_v31 = vpop.f32.mrf.mxu2 }
 0x57f   :  { %1259 = vst.msk [vmem:[#allocation2 + $0x21] sm:$0xff] %vm269_vm1, %v1241_v31  ;;  %1290 = vrot.lane.b32.xlu2 %v1241_v31, %s2853_s16 }
 0x586   :  { %v1243_v44 = vpop.f32.mrf.mxu2 }
 0x587   :  { %1260 = vst.msk [vmem:[#allocation2 + $0x29] sm:$0xff] %vm269_vm1, %v1243_v44  ;;  %1328 = vrot.lane.b32.xlu2 %v3071_v17, %s2855_s26  ;;  %1292 = vrot.lane.b32.xlu0 %v1243_v44, %s2853_s16 }
 0x58e   :  { %v1246_v59 = vpop.f32.mrf.mxu2 }
 0x58f   :  { %1261 = vst.msk [vmem:[#allocation2 + $0x31] sm:$0xff] %vm269_vm1, %v1246_v59  ;;  %1330 = vrot.lane.b32.xlu2 %v3126_v57, %s2855_s26  ;;  %1294 = vrot.lane.b32.xlu0 %v1246_v59, %s2853_s16 }
 0x596   :  { %v1248_v58 = vpop.f32.mrf.mxu2 }
 0x597   :  { %1262 = vst.msk [vmem:[#allocation2 + $0x39] sm:$0xff] %vm269_vm1, %v1248_v58  ;;  %1332 = vrot.lane.b32.xlu0 %v3151_v36, %s2855_s26  ;;  %1296 = vrot.lane.b32.xlu1 %v1248_v58, %s2853_s16 }
 0x5c9   :  { %v1283_v45 = vpop.permute.xlu0 %1282 }
 0x5ca   :  { %v1309_v35 = vadd.f32 %v1283_v45, %v1264_v7  ;;  %v1267_v7 = vld [vmem:[#allocation2 + $0x18] sm:$0xff] }
 0x5cc   :  { %v3449_v0 = vadd.f32 %v1319_v61, %v1309_v35 }
 0x5ce   :  { %v2427_v63 = vmul.f32 -1.442695, %v3449_v0 }
 0x5cf   :  { %v1289_v31 = vpop.permute.xlu2 %1288 }
 0x5d0   :  { %2639 = vpow2.f32 %v2427_v63  ;;  %v1312_v35 = vadd.f32 %v1289_v31, %v1267_v7  ;;  %v1268_v31 = vld [vmem:[#allocation2 + $0x20] sm:$0xff] }
 0x5d1   :  { %v1285_v6 = vpop.permute.xlu1 %1284  ;;  %v1321_v53 = vpop.permute.xlu0 %1320 }
 0x5d2   :  { %v1310_v30 = vadd.f32 %v1285_v6, %v1265_v2 }
 0x5d4   :  { %v3452_v9 = vadd.f32 %v1321_v53, %v1310_v30 }
 0x5d6   :  { %v2640_v42 = vpop.eup %2639  ;;  %v2428_v28 = vmul.f32 -1.442695, %v3452_v9 }
 0x5d7   :  { %v1390_v11 = vadd.f32 1.0, %v2640_v42 }
 0x5d8   :  { %2641 = vpow2.f32 %v2428_v28 }
 0x5d9   :  { %2643 = vrcp.f32 %v1390_v11  ;;  %v1323_v23 = vpop.permute.xlu0 %1322  ;;  %v1410_v44 = vand.u32 2147483648, %v1390_v11  ;;  %v1408_v45 = vand.u32 2147483647, %v1390_v11  ;;  %vm1404_vm15 = vweird.f32 %v1390_v11 }
 0x5db   :  { %v1411_v30 = vor.u32 1.1754944e-38, %v1410_v44  ;;  %vm1409_vm4 = vcmp.eq.f32.partialorder %v1408_v45, 8.507059e+37 }
 0x5de   :  { %v2642_v38 = vpop.eup %2641 }
 0x5df   :  { %v2644_v56 = vpop.eup %2643  ;;  %v1391_v13 = vadd.f32 1.0, %v2642_v38  ;;  %v1287_v16 = vpop.permute.xlu1 %1286 }
 0x5e0   :  { %v1311_v18 = vadd.f32 %v1287_v16, %v1266_v41  ;;  %v1400_v21 = vmul.f32 %v2644_v56, %v1390_v11  ;;  %vm1405_vm14 = vweird.f32 %v2644_v56 }
 0x5e1   :  { %2645 = vrcp.f32 %v1391_v13  ;;  %vm1406_vm3 = vmor %vm1404_vm15, %vm1405_vm14  ;;  %v1425_v11 = vand.u32 2147483648, %v1391_v13 }
 0x5e2   :  { %v3455_v54 = vadd.f32 %v1323_v23, %v1311_v18  ;;  %v1401_v50 = vsub.f32 1.0, %v1400_v21  ;;  %v1291_v18 = vpop.permute.xlu2 %1290 }
 0x5e3   :  { %v1426_v7 = vor.u32 1.1754944e-38, %v1425_v11 }
 0x5e4   :  { %v2429_v59 = vmul.f32 -1.442695, %v3455_v54  ;;  %v1402_v58 = vmul.f32 %v2644_v56, %v1401_v50  ;;  %v1423_v50 = vand.u32 2147483647, %v1391_v13 }
 0x5e6   :  { %2647 = vpow2.f32 %v2429_v59  ;;  %v1403_v61 = vadd.f32 %v2644_v56, %v1402_v58  ;;  %v1313_v59 = vadd.f32 %v1291_v18, %v1268_v31  ;;  %vm1424_vm7 = vcmp.eq.f32.partialorder %v1423_v50, 8.507059e+37 }
 0x5e7   :  { %v2646_v63 = vpop.eup %2645  ;;  %v1325_v6 = vpop.permute.xlu1 %1324 }
 0x5e8   :  { %v1251_v2 = vpop.f32.mrf.mxu2  ;;  %v3458_v53 = vadd.f32 %v1325_v6, %v1312_v35  ;;  %v1407_v42 = vsel %vm1406_vm3, %v2644_v56, %v1403_v61  ;;  %v1415_v28 = vmul.f32 %v2646_v63, %v1391_v13  ;;  %vm1420_vm5 = vweird.f32 %v2646_v63 }
 0x5e9   :  { %1263 = vst.msk [vmem:[#allocation2 + $0x41] sm:$0x7f] %vm348_vm2, %v1251_v2  ;;  %v1412_v38 = vsel %vm1409_vm4, %v1411_v30, %v1407_v42  ;;  %vm1419_vm2 = vweird.f32 %v1391_v13 }
 0x5ea   :  { %v2430_v16 = vmul.f32 -1.442695, %v3458_v53  ;;  %1543 = vrot.lane.b32.xlu1 %v1412_v38, %s2854_s1  ;;  %v1416_v41 = vsub.f32 1.0, %v1415_v28  ;;  %vm1421_vm6 = vmor %vm1419_vm2, %vm1420_vm5 }
 0x5ec   :  { %v2648_v21 = vpop.eup %2647  ;;  %2649 = vpow2.f32 %v2430_v16  ;;  %v1417_v23 = vmul.f32 %v2646_v63, %v1416_v41  ;;  %v1329_v41 = vpop.permute.xlu2 %1328 }
 0x5ed   :  { %v1392_v44 = vadd.f32 1.0, %v2648_v21  ;;  %v1269_v21 = vld [vmem:[#allocation2 + $0x28] sm:$0xff] }
 0x5ee   :  { %v1418_v58 = vadd.f32 %v2646_v63, %v1417_v23 }
 0x5ef   :  { %2651 = vrcp.f32 %v1392_v44  ;;  %v1327_v56 = vpop.permute.xlu1 %1326  ;;  %v1440_v11 = vand.u32 2147483648, %v1392_v44  ;;  %vm1434_vm9 = vweird.f32 %v1392_v44 }
 0x5f0   :  { %v1253_v45 = vpop.f32.mrf.mxu2  ;;  %v3463_v35 = vadd.f32 %v1327_v56, %v1313_v59  ;;  %v1422_v61 = vsel %vm1421_vm6, %v2646_v63, %v1418_v58  ;;  %v2511_v63 = vld [vmem:[%s3681_s7 + $0x10] sm:$0xff]  ;;  %v1438_v59 = vand.u32 2147483647, %v1392_v44 }
 0x5f1   :  { %v1427_v6 = vsel %vm1424_vm7, %v1426_v7, %v1422_v61  ;;  %1615 = vmatpush.bf16.msrb.mxu3 %v2511_v63  ;;  %v1270_v63 = vld [vmem:[#allocation2 + $0x30] sm:$0xff] }
 0x5f2   :  { %v2650_v30 = vpop.eup %2649  ;;  %v2431_v42 = vmul.f32 -1.442695, %v3463_v35  ;;  %1545 = vrot.lane.b32.xlu2 %v1427_v6, %s2854_s1  ;;  %v1441_v6 = vor.u32 1.1754944e-38, %v1440_v11  ;;  %vm1439_vm11 = vcmp.eq.f32.partialorder %v1438_v59, 8.507059e+37 }
 0x5f3   :  { %v1393_v28 = vadd.f32 1.0, %v2650_v30 }
 0x5f4   :  { %2653 = vpow2.f32 %v2431_v42  ;;  %v1331_v11 = vpop.permute.xlu2 %1330 }
 0x5f5   :  { %v2652_v38 = vpop.eup %2651  ;;  %2655 = vrcp.f32 %v1393_v28  ;;  %vm1449_vm14 = vweird.f32 %v1393_v28 }
 0x5f6   :  { %v1430_v13 = vmul.f32 %v2652_v38, %v1392_v44  ;;  %vm1435_vm8 = vweird.f32 %v2652_v38 }
 0x5f7   :  { %vm1436_vm10 = vmor %vm1434_vm9, %vm1435_vm8 }
 0x5f8   :  { %v1431_v16 = vsub.f32 1.0, %v1430_v13 }
 0x5f9   :  { %v1293_v18 = vpop.permute.xlu0 %1292 }
 0x5fa   :  { %v2654_v23 = vpop.eup %2653  ;;  %v1314_v50 = vadd.f32 %v1293_v18, %v1269_v21  ;;  %1298 = vrot.lane.b32.xlu2 %v1251_v2, %s2853_s16  ;;  %v1432_v31 = vmul.f32 %v2652_v38, %v1431_v16  ;;  %v1455_v16 = vand.u32 2147483648, %v1393_v28 }
 0x5fb   :  { %v2656_v58 = vpop.eup %2655  ;;  %v1394_v56 = vadd.f32 1.0, %v2654_v23 }
 0x5fc   :  { %v3471_v45 = vadd.f32 %v1329_v41, %v1314_v50  ;;  %v1433_v7 = vadd.f32 %v2652_v38, %v1432_v31  ;;  %v1445_v61 = vmul.f32 %v2656_v58, %v1393_v28  ;;  %vm1450_vm12 = vweird.f32 %v2656_v58 }
 0x5fd   :  { %2657 = vrcp.f32 %v1394_v56  ;;  %v1453_v41 = vand.u32 2147483647, %v1393_v28  ;;  %vm1451_vm15 = vmor %vm1449_vm14, %vm1450_vm12  ;;  %v1456_v31 = vor.u32 1.1754944e-38, %v1455_v16  ;;  %v1468_v16 = vand.u32 2147483647, %v1394_v56 }
 0x5fe   :  { %v2432_v30 = vmul.f32 -1.442695, %v3471_v45  ;;  %v1437_v42 = vsel %vm1436_vm10, %v2652_v38, %v1433_v7  ;;  %v1446_v13 = vsub.f32 1.0, %v1445_v61  ;;  %vm1464_vm5 = vweird.f32 %v1394_v56 }
 0x5ff   :  { %v1442_v2 = vsel %vm1439_vm11, %v1441_v6, %v1437_v42  ;;  %vm1454_vm3 = vcmp.eq.f32.partialorder %v1453_v41, 8.507059e+37  ;;  %vm1469_vm6 = vcmp.eq.f32.partialorder %v1468_v16, 8.507059e+37 }
 0x600   :  { %2659 = vpow2.f32 %v2432_v30  ;;  %1547 = vrot.lane.b32.xlu0 %v1442_v2, %s2854_s1  ;;  %v1447_v18 = vmul.f32 %v2656_v58, %v1446_v13  ;;  %v1470_v2 = vand.u32 2147483648, %v1394_v56 }
 0x601   :  { %v1295_v21 = vpop.permute.xlu0 %1294 }
 0x602   :  { %v1315_v44 = vadd.f32 %v1295_v21, %v1270_v63  ;;  %v1448_v23 = vadd.f32 %v2656_v58, %v1447_v18  ;;  %v1271_v18 = vld [vmem:[#allocation2 + $0x38] sm:$0xff] }
 0x603   :  { %v2658_v50 = vpop.eup %2657 }
 0x604   :  { %v3475_v38 = vadd.f32 %v1331_v11, %v1315_v44  ;;  %v1452_v59 = vsel %vm1451_vm15, %v2656_v58, %v1448_v23  ;;  %v1460_v7 = vmul.f32 %v2658_v50, %v1394_v56  ;;  %vm1465_vm4 = vweird.f32 %v2658_v50 }
 0x605   :  { %v1457_v61 = vsel %vm1454_vm3, %v1456_v31, %v1452_v59  ;;  %vm1466_vm2 = vmor %vm1464_vm5, %vm1465_vm4  ;;  %v1471_v44 = vor.u32 1.1754944e-38, %v1470_v2 }
 0x606   :  { %v2660_v6 = vpop.eup %2659  ;;  %v2433_v30 = vmul.f32 -1.442695, %v3475_v38  ;;  %1549 = vrot.lane.b32.xlu1 %v1457_v61, %s2854_s1  ;;  %v1461_v42 = vsub.f32 1.0, %v1460_v7 }
 0x607   :  { %v1395_v13 = vadd.f32 1.0, %v2660_v6 }
 0x608   :  { %2661 = vpow2.f32 %v2433_v30  ;;  %1334 = vrot.lane.b32.xlu0 %v3175_v43, %s2855_s26  ;;  %v1462_v28 = vmul.f32 %v2658_v50, %v1461_v42 }
 0x609   :  { %2663 = vrcp.f32 %v1395_v13  ;;  %v1297_v58 = vpop.permute.xlu1 %1296  ;;  %v1333_v63 = vpop.permute.xlu0 %1332  ;;  %v1485_v56 = vand.u32 2147483648, %v1395_v13  ;;  %v1483_v2 = vand.u32 2147483647, %v1395_v13  ;;  %vm1479_vm8 = vweird.f32 %v1395_v13 }
 0x60a   :  { %v1316_v41 = vadd.f32 %v1297_v58, %v1271_v18  ;;  %v1463_v21 = vadd.f32 %v2658_v50, %v1462_v28 }
 0x60b   :  { %vm1484_vm10 = vcmp.eq.f32.partialorder %v1483_v2, 8.507059e+37 }
 0x60c   :  { %v3481_v23 = vadd.f32 %v1333_v63, %v1316_v41  ;;  %v1467_v11 = vsel %vm1466_vm2, %v2658_v50, %v1463_v21  ;;  %v1486_v41 = vor.u32 1.1754944e-38, %v1485_v56 }
 0x60d   :  { %v1472_v31 = vsel %vm1469_vm6, %v1471_v44, %v1467_v11 }
 0x60e   :  { %v2662_v59 = vpop.eup %2661  ;;  %v2434_v7 = vmul.f32 -1.442695, %v3481_v23  ;;  %1551 = vrot.lane.b32.xlu1 %v1472_v31, %s2854_s1 }
 0x60f   :  { %v2664_v61 = vpop.eup %2663  ;;  %v1396_v6 = vadd.f32 1.0, %v2662_v59 }
 0x610   :  { %2665 = vpow2.f32 %v2434_v7  ;;  %v1475_v30 = vmul.f32 %v2664_v61, %v1395_v13  ;;  %vm1480_vm7 = vweird.f32 %v2664_v61 }
 0x611   :  { %2667 = vrcp.f32 %v1396_v6  ;;  %vm1481_vm9 = vmor %vm1479_vm8, %vm1480_vm7  ;;  %v1500_v31 = vand.u32 2147483648, %v1396_v6  ;;  %v1498_v7 = vand.u32 2147483647, %v1396_v6  ;;  %vm1494_vm12 = vweird.f32 %v1396_v6 }
 0x612   :  { %v1476_v42 = vsub.f32 1.0, %v1475_v30 }
 0x613   :  { %v1501_v13 = vor.u32 1.1754944e-38, %v1500_v31  ;;  %vm1499_vm15 = vcmp.eq.f32.partialorder %v1498_v7, 8.507059e+37 }
 0x614   :  { %v1477_v28 = vmul.f32 %v2664_v61, %v1476_v42 }
 0x616   :  { %v2666_v58 = vpop.eup %2665  ;;  %v1478_v18 = vadd.f32 %v2664_v61, %v1477_v28 }
 0x617   :  { %v2668_v50 = vpop.eup %2667  ;;  %v1397_v16 = vadd.f32 1.0, %v2666_v58 }
 0x618   :  { %v1482_v21 = vsel %vm1481_vm9, %v2664_v61, %v1478_v18  ;;  %v1490_v63 = vmul.f32 %v2668_v50, %v1396_v6  ;;  %vm1495_vm11 = vweird.f32 %v2668_v50 }
 0x619   :  { %2669 = vrcp.f32 %v1397_v16  ;;  %v1487_v44 = vsel %vm1484_vm10, %v1486_v41, %v1482_v21  ;;  %vm1496_vm14 = vmor %vm1494_vm12, %vm1495_vm11  ;;  %v1515_v58 = vand.u32 2147483648, %v1397_v16  ;;  %v1513_v41 = vand.u32 2147483647, %v1397_v16 }
 0x61a   :  { %1553 = vrot.lane.b32.xlu2 %v1487_v44, %s2854_s1  ;;  %v1491_v11 = vsub.f32 1.0, %v1490_v63  ;;  %vm1509_vm4 = vweird.f32 %v1397_v16  ;;  %2671 = vtanh.f32 %v3449_v0  ;;  %v1272_v0 = vld [vmem:[#allocation2 + $0x40] sm:$0xff] }
 0x61b   :  { %v1516_v63 = vor.u32 1.1754944e-38, %v1515_v58  ;;  %vm1514_vm2 = vcmp.eq.f32.partialorder %v1513_v41, 8.507059e+37  ;;  %2673 = vtanh.f32 %v3452_v9 }
 0x61c   :  { %v1492_v59 = vmul.f32 %v2668_v50, %v1491_v11  ;;  %2675 = vtanh.f32 %v3455_v54 }
 0x61d   :  { %2677 = vtanh.f32 %v3458_v53 }
 0x61e   :  { %v1493_v30 = vadd.f32 %v2668_v50, %v1492_v59  ;;  %2679 = vtanh.f32 %v3463_v35  ;;  %v2512_v35 = vld [vmem:[%s3678_s4 + $0x18] sm:$0xff]  ;;  %s2856_s4 = smov 32  }
 0x61f   :  { %v2670_v42 = vpop.eup %2669  ;;  %2681 = vtanh.f32 %v3471_v45  ;;  %1695 = vmatpush.bf16.msra.mxu0 %v2512_v35 }
 0x620   :  { %v1497_v28 = vsel %vm1496_vm14, %v2668_v50, %v1493_v30  ;;  %v1505_v56 = vmul.f32 %v2670_v42, %v1397_v16  ;;  %vm1510_vm3 = vweird.f32 %v2670_v42  ;;  %v2672_v11 = vpop.eup %2671 }
 0x621   :  { %v1502_v61 = vsel %vm1499_vm15, %v1501_v13, %v1497_v28  ;;  %vm1511_vm5 = vmor %vm1509_vm4, %vm1510_vm3  ;;  %v2674_v31 = vpop.eup %2673 }
 0x622   :  { %1555 = vrot.lane.b32.xlu0 %v1502_v61, %s2854_s1  ;;  %v1506_v2 = vsub.f32 1.0, %v1505_v56  ;;  %v2676_v28 = vpop.eup %2675 }
 0x623   :  { %v2678_v56 = vpop.eup %2677 }
 0x624   :  { %v1507_v18 = vmul.f32 %v2670_v42, %v1506_v2  ;;  %v2680_v53 = vpop.eup %2679 }
 0x626   :  { %v1508_v21 = vadd.f32 %v2670_v42, %v1507_v18 }
 0x628   :  { %v1512_v44 = vsel %vm1511_vm5, %v2670_v42, %v1508_v21 }
 0x629   :  { %v1517_v6 = vsel %vm1514_vm2, %v1516_v63, %v1512_v44  ;;  %v2682_v44 = vpop.eup %2681 }
 0x62a   :  { %1557 = vrot.lane.b32.xlu1 %v1517_v6, %s2854_s1 }
 0x64c   :  { %v1546_v50 = vpop.permute.xlu2 %1545 }
 0x64d   :  { %v1571_v7 = vmul.f32 %v2674_v31, %v1546_v50 }
 0x654   :  { %v1299_v42 = vpop.permute.xlu2 %1298 }
 0x655   :  { %v1317_v9 = vadd.f32 %v1299_v42, %v1272_v0 }
 0x65c   :  { %v1544_v59 = vpop.permute.xlu1 %1543 }
 0x65d   :  { %v1570_v30 = vmul.f32 %v2672_v11, %v1544_v59 }
 0x65f   :  { %v1579_v13 = vpack.c.bf16 %v1571_v7, %v1570_v30 }
 0x661   :  { %2442 = vmatmul.msk.bf16.vlgmr.msrb.gmra.mxu3 %vm137_vm0, %v1579_v13 }
 0x672   :  { %v1548_v16 = vpop.permute.xlu0 %1547 }
 0x673   :  { %v1572_v2 = vmul.f32 %v2676_v28, %v1548_v16 }
 0x674   :  { %v1554_v54 = vpop.permute.xlu2 %1553 }
 0x675   :  { %v1575_v50 = vmul.f32 %v2682_v44, %v1554_v54 }
 0x678   :  { %v1550_v61 = vpop.permute.xlu1 %1549 }
 0x679   :  { %v1573_v58 = vmul.f32 %v2678_v56, %v1550_v61 }
 0x67a   :  { %v1335_v18 = vpop.permute.xlu0 %1334 }
 0x67b   :  { %v1580_v41 = vpack.c.bf16 %v1573_v58, %v1572_v2  ;;  %v1353_v21 = vadd.f32 %v1335_v18, %v1317_v9 }
 0x67d   :  { %v2435_v63 = vmul.f32 -1.442695, %v1353_v21  ;;  %2443 = vmatmul.msk.bf16.gmra.mxu3 %vm137_vm0, %v1580_v41 }
 0x67f   :  { %2683 = vpow2.f32 %v2435_v63 }
 0x680   :  { %v1552_v6 = vpop.permute.xlu1 %1551 }
 0x681   :  { %v1574_v11 = vmul.f32 %v2680_v53, %v1552_v6  ;;  %v1185_v6 = vadd.f32 %v3351_v8, %v3190_v4  ;;  %v1186_v4 = vadd.f32 %v3364_v10, %v3203_v60 }
 0x683   :  { %v1581_v31 = vpack.c.bf16 %v1575_v50, %v1574_v11 }
 0x685   :  { %v2684_v45 = vpop.eup %2683 }
 0x686   :  { %v1398_v59 = vadd.f32 1.0, %v2684_v45 }
 0x688   :  { %2685 = vrcp.f32 %v1398_v59  ;;  %v1530_v16 = vand.u32 2147483648, %v1398_v59  ;;  %v1528_v28 = vand.u32 2147483647, %v1398_v59  ;;  %vm1524_vm7 = vweird.f32 %v1398_v59 }
 0x689   :  { %2687 = vtanh.f32 %v3475_v38  ;;  %v1184_v38 = vadd.f32 %v3349_v1, %v3188_v33 }
 0x68a   :  { %2689 = vtanh.f32 %v3481_v23  ;;  %v1531_v0 = vor.u32 1.1754944e-38, %v1530_v16  ;;  %vm1529_vm9 = vcmp.eq.f32.partialorder %v1528_v28, 8.507059e+37  ;;  %v1189_v28 = vadd.f32 %v3382_v48, %v3221_v47 }
 0x68b   :  { %2691 = vtanh.f32 %v1353_v21 }
 0x68d   :  { %2444 = vmatmul.msk.bf16.gmra.mxu3 %vm137_vm0, %v1581_v31 }
 0x68e   :  { %v2686_v7 = vpop.eup %2685 }
 0x68f   :  { %v1520_v30 = vmul.f32 %v2686_v7, %v1398_v59  ;;  %vm1525_vm6 = vweird.f32 %v2686_v7  ;;  %v2688_v58 = vpop.eup %2687 }
 0x690   :  { %vm1526_vm8 = vmor %vm1524_vm7, %vm1525_vm6  ;;  %v2690_v18 = vpop.eup %2689 }
 0x691   :  { %v1521_v13 = vsub.f32 1.0, %v1520_v30 }
 0x693   :  { %v1522_v42 = vmul.f32 %v2686_v7, %v1521_v13 }
 0x694   :  { %v1556_v2 = vpop.permute.xlu0 %1555 }
 0x695   :  { %v1523_v56 = vadd.f32 %v2686_v7, %v1522_v42  ;;  %v1576_v63 = vmul.f32 %v2688_v58, %v1556_v2  ;;  %v1188_v42 = vadd.f32 %v3380_v22, %v3219_v34 }
 0x697   :  { %v1527_v61 = vsel %vm1526_vm8, %v2686_v7, %v1523_v56 }
 0x698   :  { %v1532_v9 = vsel %vm1529_vm9, %v1531_v0, %v1527_v61  ;;  %v1190_v0 = vadd.f32 %v3395_v24, %v3234_v49  ;;  %v1192_v49 = vadd.f32 %v3413_v25, %v3255_v29 }
 0x699   :  { %1559 = vrot.lane.b32.xlu2 %v1532_v9, %s2854_s1 }
 0x69c   :  { %v1558_v41 = vpop.permute.xlu1 %1557 }
 0x69d   :  { %v1577_v54 = vmul.f32 %v2690_v18, %v1558_v41 }
 0x69f   :  { %v1582_v53 = vpack.c.bf16 %v1577_v54, %v1576_v63 }
 0x6a1   :  { %2445 = vmatmul.msk.bf16.gmra.mxu3 %vm137_vm0, %v1582_v53  ;;  %1784 = vrot.lane.b32.xlu2 %v3047_v55, %s2856_s4  ;;  %v2692_v55 = vpop.eup %2691 }
 0x6e4   :  { %v1617_v23 = vpop.f32.mrf.mxu3 }
 0x6e5   :  { %v3508_v44 = vadd.f32 %v1617_v23, %v1184_v38  ;;  %v1641_v11 = vadd.f32 %v1617_v23, %v3355_v5  ;;  %v1187_v5 = vadd.f32 %v3367_v37, %v3206_v46 }
 0x6ec   :  { %v1619_v50 = vpop.f32.mrf.mxu3 }
 0x6ed   :  { %v1642_v35 = vadd.f32 %v1619_v50, %v3359_v14  ;;  %v3514_v31 = vadd.f32 %v1619_v50, %v1185_v6 }
 0x6ef   :  { %v1659_v45 = vpack.c.bf16 %v1642_v35, %v1641_v11 }
 0x6f1   :  { %2453 = vmatmul.msk.bf16.vlgmr.msra.gmra.mxu0 %vm137_vm0, %v1659_v45 }
 0x6f3   :  { %v1560_v59 = vpop.permute.xlu2 %1559 }
 0x6f4   :  { %v1578_v33 = vmul.f32 %v2692_v55, %v1560_v59 }
 0x6f6   :  { %v1583_v1 = vpack.c.bf16 %v1578_v33, %v1578_v33 }
 0x6f8   :  { %2446 = vmatmul.msk.bf16.gmra.mxu3 %vm137_vm0, %v1583_v1 }
 0x700   :  { %v1622_v8 = vpop.f32.mrf.mxu3 }
 0x701   :  { %v3520_v21 = vadd.f32 %v1622_v8, %v1186_v4  ;;  %v1643_v7 = vadd.f32 %v1622_v8, %v3371_v39 }
 0x708   :  { %v1624_v14 = vpop.f32.mrf.mxu3 }
 0x709   :  { %v1644_v30 = vadd.f32 %v1624_v14, %v3375_v19  ;;  %v3526_v13 = vadd.f32 %v1624_v14, %v1187_v5 }
 0x70b   :  { %v1660_v16 = vpack.c.bf16 %v1644_v30, %v1643_v7 }
 0x70d   :  { %2454 = vmatmul.msk.bf16.gmra.mxu0 %vm137_vm0, %v1660_v16 }
 0x710   :  { %v1627_v60 = vpop.f32.mrf.mxu3 }
 0x711   :  { %v3531_v10 = vadd.f32 %v1627_v60, %v1188_v42  ;;  %v1645_v37 = vadd.f32 %v1627_v60, %v3386_v20 }
 0x718   :  { %v1629_v46 = vpop.f32.mrf.mxu3 }
 0x719   :  { %v1646_v39 = vadd.f32 %v1629_v46, %v3390_v12  ;;  %v3537_v19 = vadd.f32 %v1629_v46, %v1189_v28 }
 0x71b   :  { %v1661_v56 = vpack.c.bf16 %v1646_v39, %v1645_v37 }
 0x71d   :  { %2455 = vmatmul.msk.bf16.gmra.mxu0 %vm137_vm0, %v1661_v56 }
 0x724   :  { %v1632_v34 = vpop.f32.mrf.mxu3 }
 0x725   :  { %v3542_v22 = vadd.f32 %v1632_v34, %v1190_v0  ;;  %v1647_v47 = vadd.f32 %v1632_v34, %v3401_v32 }
 0x72c   :  { %v3544_v61 = vpop.f32.mrf.mxu3 }
 0x72d   :  { %v1648_v48 = vadd.f32 %v3544_v61, %v3405_v27 }
 0x72f   :  { %v1662_v20 = vpack.c.bf16 %v1648_v48, %v1647_v47 }
 0x731   :  { %2456 = vmatmul.msk.bf16.gmra.mxu0 %vm137_vm0, %v1662_v20 }
 0x76e   :  { %v1697_v12 = vpop.f32.mrf.mxu0 }
 0x76f   :  { %1721 = vst.msk [vmem:[#allocation2 + $0x2] sm:$0xff] %vm269_vm1, %v1697_v12  ;;  %1748 = vrot.lane.b32.xlu0 %v1697_v12, %s2853_s16 }
 0x776   :  { %v1699_v9 = vpop.f32.mrf.mxu0 }
 0x777   :  { %1722 = vst.msk [vmem:[#allocation2 + $0xa] sm:$0xff] %vm269_vm1, %v1699_v9  ;;  %1786 = vrot.lane.b32.xlu0 %v3057_v3, %s2856_s4  ;;  %1750 = vrot.lane.b32.xlu1 %v1699_v9, %s2853_s16 }
 0x77b   :  { %v1637_v24 = vpop.f32.mrf.mxu3 }
 0x77c   :  { %v1649_v32 = vadd.f32 %v1637_v24, %v3420_v52  ;;  %v3559_v27 = vadd.f32 %v1637_v24, %v1192_v49  ;;  %v1730_v52 = vld [vmem:[#allocation2] sm:$0xff] }
 0x77e   :  { %v1663_v2 = vpack.c.bf16 %v1649_v32, %v1649_v32  ;;  %v1731_v54 = vld [vmem:[#allocation2 + $0x8] sm:$0xff] }
 0x77f   :  { %1788 = vrot.lane.b32.xlu0 %v3068_v15, %s2856_s4 }
 0x780   :  { %2457 = vmatmul.msk.bf16.gmra.mxu0 %vm137_vm0, %v1663_v2 }
 0x783   :  { %v1639_v58 = vpop.f32.mrf.mxu3 }
 0x78a   :  { %v1702_v18 = vpop.f32.mrf.mxu0 }
 0x78b   :  { %1723 = vst.msk [vmem:[#allocation2 + $0x12] sm:$0xff] %vm269_vm1, %v1702_v18  ;;  %1752 = vrot.lane.b32.xlu1 %v1702_v18, %s2853_s16 }
 0x792   :  { %v1704_v3 = vpop.f32.mrf.mxu0  ;;  %v1732_v5 = vld [vmem:[#allocation2 + $0x10] sm:$0xff] }
 0x793   :  { %1724 = vst.msk [vmem:[#allocation2 + $0x1a] sm:$0xff] %vm269_vm1, %v1704_v3  ;;  %1790 = vrot.lane.b32.xlu1 %v3085_v40, %s2856_s4  ;;  %1754 = vrot.lane.b32.xlu2 %v1704_v3, %s2853_s16 }
 0x79a   :  { %v1707_v29 = vpop.f32.mrf.mxu0  ;;  %v1733_v34 = vld [vmem:[#allocation2 + $0x18] sm:$0xff] }
 0x79b   :  { %1725 = vst.msk [vmem:[#allocation2 + $0x22] sm:$0xff] %vm269_vm1, %v1707_v29  ;;  %1792 = vrot.lane.b32.xlu1 %v3054_v62, %s2856_s4  ;;  %1756 = vrot.lane.b32.xlu2 %v1707_v29, %s2853_s16 }
 0x7a2   :  { %v1709_v15 = vpop.f32.mrf.mxu0 }
 0x7a3   :  { %1726 = vst.msk [vmem:[#allocation2 + $0x2a] sm:$0xff] %vm269_vm1, %v1709_v15  ;;  %1758 = vrot.lane.b32.xlu0 %v1709_v15, %s2853_s16  ;;  %1794 = vrot.lane.b32.xlu2 %v3071_v17, %s2856_s4  ;;  %v1785_v17 = vpop.permute.xlu2 %1784 }
 0x7ab   :  { %1796 = vrot.lane.b32.xlu2 %v3126_v57, %s2856_s4 }
 0x7ae   :  { %v1712_v40 = vpop.f32.mrf.mxu0 }
 0x7af   :  { %1727 = vst.msk [vmem:[#allocation2 + $0x32] sm:$0xff] %vm269_vm1, %v1712_v40  ;;  %1760 = vrot.lane.b32.xlu0 %v1712_v40, %s2853_s16 }
 0x7b6   :  { %v1714_v25 = vpop.f32.mrf.mxu0 }
 0x7b7   :  { %1728 = vst.msk [vmem:[#allocation2 + $0x3a] sm:$0xff] %vm269_vm1, %v1714_v25  ;;  %1798 = vrot.lane.b32.xlu0 %v3151_v36, %s2856_s4  ;;  %1762 = vrot.lane.b32.xlu1 %v1714_v25, %s2853_s16 }
 0x7e1   :  { %v1749_v62 = vpop.permute.xlu0 %1748 }
 0x7e2   :  { %v1775_v41 = vadd.f32 %v1749_v62, %v1730_v52  ;;  %v1734_v62 = vld [vmem:[#allocation2 + $0x20] sm:$0xff] }
 0x7e4   :  { %v3586_v63 = vadd.f32 %v1785_v17, %v1775_v41 }
 0x7e6   :  { %v2458_v57 = vmul.f32 -1.442695, %v3586_v63 }
 0x7e8   :  { %2693 = vpow2.f32 %v2458_v57 }
 0x7e9   :  { %v1751_v53 = vpop.permute.xlu1 %1750  ;;  %v1787_v23 = vpop.permute.xlu0 %1786 }
 0x7ea   :  { %v1776_v38 = vadd.f32 %v1751_v53, %v1731_v54 }
 0x7ec   :  { %v3589_v6 = vadd.f32 %v1787_v23, %v1776_v38 }
 0x7ed   :  { %v1755_v60 = vpop.permute.xlu2 %1754 }
 0x7ee   :  { %v2694_v50 = vpop.eup %2693  ;;  %v2459_v36 = vmul.f32 -1.442695, %v3589_v6  ;;  %v1778_v20 = vadd.f32 %v1755_v60, %v1733_v34 }
 0x7ef   :  { %v1856_v11 = vadd.f32 1.0, %v2694_v50 }
 0x7f0   :  { %2695 = vpow2.f32 %v2459_v36 }
 0x7f1   :  { %2697 = vrcp.f32 %v1856_v11  ;;  %v1876_v1 = vand.u32 2147483648, %v1856_v11  ;;  %v1874_v8 = vand.u32 2147483647, %v1856_v11  ;;  %vm1870_vm10 = vweird.f32 %v1856_v11  ;;  %v1789_v28 = vpop.permute.xlu0 %1788 }
 0x7f3   :  { %v1877_v46 = vor.u32 1.1754944e-38, %v1876_v1  ;;  %vm1875_vm12 = vcmp.eq.f32.partialorder %v1874_v8, 8.507059e+37 }
 0x7f5   :  { %v1757_v15 = vpop.permute.xlu2 %1756 }
 0x7f6   :  { %v2696_v35 = vpop.eup %2695  ;;  %v1779_v41 = vadd.f32 %v1757_v15, %v1734_v62 }
 0x7f7   :  { %v2698_v45 = vpop.eup %2697  ;;  %v1857_v55 = vadd.f32 1.0, %v2696_v35 }
 0x7f8   :  { %v1866_v59 = vmul.f32 %v2698_v45, %v1856_v11  ;;  %vm1871_vm1 = vweird.f32 %v2698_v45  ;;  %v1735_v11 = vld [vmem:[#allocation2 + $0x28] sm:$0xff] }
 0x7f9   :  { %2699 = vrcp.f32 %v1857_v55  ;;  %vm1872_vm11 = vmor %vm1870_vm10, %vm1871_vm1  ;;  %v1891_v12 = vand.u32 2147483648, %v1857_v55  ;;  %v1889_v49 = vand.u32 2147483647, %v1857_v55  ;;  %vm1885_vm14 = vweird.f32 %v1857_v55 }
 0x7fa   :  { %v1867_v33 = vsub.f32 1.0, %v1866_v59 }
 0x7fb   :  { %v1892_v18 = vor.u32 1.1754944e-38, %v1891_v12  ;;  %vm1890_vm3 = vcmp.eq.f32.partialorder %v1889_v49, 8.507059e+37 }
 0x7fc   :  { %v1868_v4 = vmul.f32 %v2698_v45, %v1867_v33 }
 0x7fd   :  { %v1753_v14 = vpop.permute.xlu1 %1752  ;;  %v1717_v30 = vpop.f32.mrf.mxu0 }
 0x7fe   :  { %v1777_v7 = vadd.f32 %v1753_v14, %v1732_v5  ;;  %v1869_v16 = vadd.f32 %v2698_v45, %v1868_v4  ;;  %1729 = vst.msk [vmem:[#allocation2 + $0x42] sm:$0x3f] %vm787_vm13, %v1717_v30  ;;  %1764 = vrot.lane.b32.xlu0 %v1717_v30, %s2853_s16  ;;  %s2294_s16 = sshll.u32 %s3686_s12, 4  ;;  %s2295_s16 = int_to_ptr.hbm [resolvable:$true] %s2294_s16 }
 0x7ff   :  { %v2700_v42 = vpop.eup %2699 }
 0x800   :  { %v3594_v37 = vadd.f32 %v1789_v28, %v1777_v7  ;;  %v1873_v39 = vsel %vm1872_vm11, %v2698_v45, %v1869_v16  ;;  %v1881_v56 = vmul.f32 %v2700_v42, %v1857_v55  ;;  %vm1886_vm13 = vweird.f32 %v2700_v42 }
 0x801   :  { %v1878_v0 = vsel %vm1875_vm12, %v1877_v46, %v1873_v39  ;;  %vm1887_vm15 = vmor %vm1885_vm14, %vm1886_vm13 }
 0x802   :  { %v2460_v47 = vmul.f32 -1.442695, %v3594_v37  ;;  %2009 = vrot.lane.b32.xlu1 %v1878_v0, %s2854_s1  ;;  %v1882_v48 = vsub.f32 1.0, %v1881_v56 }
 0x804   :  { %2701 = vpow2.f32 %v2460_v47  ;;  %v1883_v9 = vmul.f32 %v2700_v42, %v1882_v48  ;;  %v1736_v48 = vld [vmem:[#allocation2 + $0x30] sm:$0xff] }
 0x805   :  { %v1791_v24 = vpop.permute.xlu1 %1790  ;;  %v1719_v2 = vpop.f32.mrf.mxu0 }
 0x806   :  { %v3598_v32 = vadd.f32 %v1791_v24, %v1778_v20  ;;  %v1884_v58 = vadd.f32 %v2700_v42, %v1883_v9 }
 0x808   :  { %v2461_v3 = vmul.f32 -1.442695, %v3598_v32  ;;  %v1888_v29 = vsel %vm1887_vm15, %v2700_v42, %v1884_v58 }
 0x809   :  { %v1893_v40 = vsel %vm1890_vm3, %v1892_v18, %v1888_v29 }
 0x80a   :  { %v2702_v25 = vpop.eup %2701  ;;  %2703 = vpow2.f32 %v2461_v3  ;;  %2011 = vrot.lane.b32.xlu2 %v1893_v40, %s2854_s1  ;;  %1800 = vrot.lane.b32.xlu1 %v3175_v43, %s2856_s4  ;;  %v1795_v43 = vpop.permute.xlu2 %1794 }
 0x80b   :  { %v1858_v52 = vadd.f32 1.0, %v2702_v25 }
 0x80d   :  { %2705 = vrcp.f32 %v1858_v52  ;;  %v1793_v17 = vpop.permute.xlu1 %1792  ;;  %v1906_v55 = vand.u32 2147483648, %v1858_v52  ;;  %v1904_v4 = vand.u32 2147483647, %v1858_v52  ;;  %vm1900_vm5 = vweird.f32 %v1858_v52 }
 0x80e   :  { %v3604_v57 = vadd.f32 %v1793_v17, %v1779_v41  ;;  %v1737_v17 = vld [vmem:[#allocation2 + $0x38] sm:$0xff] }
 0x80f   :  { %v1907_v16 = vor.u32 1.1754944e-38, %v1906_v55  ;;  %vm1905_vm6 = vcmp.eq.f32.partialorder %v1904_v4, 8.507059e+37 }
 0x810   :  { %v2704_v54 = vpop.eup %2703  ;;  %v2462_v53 = vmul.f32 -1.442695, %v3604_v57 }
 0x811   :  { %v1859_v38 = vadd.f32 1.0, %v2704_v54 }
 0x812   :  { %2707 = vpow2.f32 %v2462_v53  ;;  %v1797_v2 = vpop.permute.xlu2 %1796 }
 0x813   :  { %v2706_v23 = vpop.eup %2705  ;;  %2709 = vrcp.f32 %v1859_v38  ;;  %v1921_v46 = vand.u32 2147483648, %v1859_v38  ;;  %v1919_v56 = vand.u32 2147483647, %v1859_v38  ;;  %vm1915_vm8 = vweird.f32 %v1859_v38 }
 0x814   :  { %v1896_v50 = vmul.f32 %v2706_v23, %v1858_v52  ;;  %vm1901_vm4 = vweird.f32 %v2706_v23 }
 0x815   :  { %v1759_v36 = vpop.permute.xlu0 %1758  ;;  %vm1902_vm2 = vmor %vm1900_vm5, %vm1901_vm4  ;;  %v1922_v20 = vor.u32 1.1754944e-38, %v1921_v46  ;;  %vm1920_vm1 = vcmp.eq.f32.partialorder %v1919_v56, 8.507059e+37 }
 0x816   :  { %v1780_v35 = vadd.f32 %v1759_v36, %v1735_v11  ;;  %v1897_v45 = vsub.f32 1.0, %v1896_v50 }
 0x818   :  { %v2708_v59 = vpop.eup %2707  ;;  %v3607_v33 = vadd.f32 %v1795_v43, %v1780_v35  ;;  %v1898_v1 = vmul.f32 %v2706_v23, %v1897_v45 }
 0x819   :  { %v2710_v8 = vpop.eup %2709  ;;  %v1860_v5 = vadd.f32 1.0, %v2708_v59 }
 0x81a   :  { %v2463_v14 = vmul.f32 -1.442695, %v3607_v33  ;;  %v1899_v7 = vadd.f32 %v2706_v23, %v1898_v1  ;;  %v1911_v30 = vmul.f32 %v2710_v8, %v1859_v38  ;;  %vm1916_vm7 = vweird.f32 %v2710_v8 }
 0x81b   :  { %2711 = vrcp.f32 %v1860_v5  ;;  %vm1917_vm9 = vmor %vm1915_vm8, %vm1916_vm7  ;;  %v1936_v15 = vand.u32 2147483648, %v1860_v5  ;;  %v1934_v62 = vand.u32 2147483647, %v1860_v5  ;;  %vm1930_vm11 = vweird.f32 %v1860_v5 }
 0x81c   :  { %2713 = vpow2.f32 %v2463_v14  ;;  %v1903_v42 = vsel %vm1902_vm2, %v2706_v23, %v1899_v7  ;;  %v1912_v60 = vsub.f32 1.0, %v1911_v30  ;;  %v2513_v23 = vld [vmem:[%s3681_s7 + $0x18] sm:$0xff] }
 0x81d   :  { %v1908_v28 = vsel %vm1905_vm6, %v1907_v16, %v1903_v42  ;;  %v1937_v54 = vor.u32 1.1754944e-38, %v1936_v15  ;;  %vm1935_vm13 = vcmp.eq.f32.partialorder %v1934_v62, 8.507059e+37  ;;  %2081 = vmatpush.bf16.msra.mxu1 %v2513_v23 }
 0x81e   :  { %2013 = vrot.lane.b32.xlu2 %v1908_v28, %s2854_s1  ;;  %v1913_v39 = vmul.f32 %v2710_v8, %v1912_v60 }
 0x820   :  { %v1914_v0 = vadd.f32 %v2710_v8, %v1913_v39 }
 0x821   :  { %v2712_v34 = vpop.eup %2711  ;;  %v1761_v47 = vpop.permute.xlu0 %1760 }
 0x822   :  { %v2714_v12 = vpop.eup %2713  ;;  %v1781_v9 = vadd.f32 %v1761_v47, %v1736_v48  ;;  %v1918_v49 = vsel %vm1917_vm9, %v2710_v8, %v1914_v0  ;;  %v1926_v24 = vmul.f32 %v2712_v34, %v1860_v5  ;;  %vm1931_vm10 = vweird.f32 %v2712_v34 }
 0x823   :  { %v1861_v58 = vadd.f32 1.0, %v2714_v12  ;;  %v1923_v18 = vsel %vm1920_vm1, %v1922_v20, %v1918_v49  ;;  %vm1932_vm12 = vmor %vm1930_vm11, %vm1931_vm10 }
 0x824   :  { %v3611_v3 = vadd.f32 %v1797_v2, %v1781_v9  ;;  %2015 = vrot.lane.b32.xlu0 %v1923_v18, %s2854_s1  ;;  %v1927_v29 = vsub.f32 1.0, %v1926_v24 }
 0x825   :  { %2715 = vrcp.f32 %v1861_v58  ;;  %v1951_v4 = vand.u32 2147483648, %v1861_v58  ;;  %v1949_v5 = vand.u32 2147483647, %v1861_v58  ;;  %vm1945_vm15 = vweird.f32 %v1861_v58 }
 0x826   :  { %v2464_v40 = vmul.f32 -1.442695, %v3611_v3  ;;  %v1928_v25 = vmul.f32 %v2712_v34, %v1927_v29 }
 0x827   :  { %v1952_v7 = vor.u32 1.1754944e-38, %v1951_v4  ;;  %vm1950_vm4 = vcmp.eq.f32.partialorder %v1949_v5, 8.507059e+37 }
 0x828   :  { %2717 = vpow2.f32 %v2464_v40  ;;  %v1929_v52 = vadd.f32 %v2712_v34, %v1928_v25 }
 0x829   :  { %v1763_v41 = vpop.permute.xlu1 %1762  ;;  %v1799_v36 = vpop.permute.xlu0 %1798 }
 0x82a   :  { %v1782_v53 = vadd.f32 %v1763_v41, %v1737_v17  ;;  %v1933_v38 = vsel %vm1932_vm12, %v2712_v34, %v1929_v52 }
 0x82b   :  { %v2716_v50 = vpop.eup %2715  ;;  %v1938_v11 = vsel %vm1935_vm13, %v1937_v54, %v1933_v38 }
 0x82c   :  { %v3618_v35 = vadd.f32 %v1799_v36, %v1782_v53  ;;  %2017 = vrot.lane.b32.xlu1 %v1938_v11, %s2854_s1  ;;  %v1941_v45 = vmul.f32 %v2716_v50, %v1861_v58  ;;  %vm1946_vm14 = vweird.f32 %v2716_v50 }
 0x82d   :  { %vm1947_vm3 = vmor %vm1945_vm15, %vm1946_vm14 }
 0x82e   :  { %v2718_v43 = vpop.eup %2717  ;;  %v2465_v55 = vmul.f32 -1.442695, %v3618_v35  ;;  %v1942_v59 = vsub.f32 1.0, %v1941_v45 }
 0x82f   :  { %v1862_v1 = vadd.f32 1.0, %v2718_v43 }
 0x830   :  { %2719 = vpow2.f32 %v2465_v55  ;;  %v1943_v8 = vmul.f32 %v2716_v50, %v1942_v59 }
 0x831   :  { %2721 = vrcp.f32 %v1862_v1  ;;  %v1966_v56 = vand.u32 2147483648, %v1862_v1  ;;  %v1964_v34 = vand.u32 2147483647, %v1862_v1  ;;  %vm1960_vm2 = vweird.f32 %v1862_v1 }
 0x832   :  { %v1944_v14 = vadd.f32 %v2716_v50, %v1943_v8 }
 0x833   :  { %v1967_v20 = vor.u32 1.1754944e-38, %v1966_v56  ;;  %vm1965_vm7 = vcmp.eq.f32.partialorder %v1964_v34, 8.507059e+37 }
 0x834   :  { %v1948_v30 = vsel %vm1947_vm3, %v2716_v50, %v1944_v14  ;;  %v1738_v50 = vld [vmem:[#allocation2 + $0x40] sm:$0xff] }
 0x835   :  { %v1953_v16 = vsel %vm1950_vm4, %v1952_v7, %v1948_v30 }
 0x836   :  { %v2720_v42 = vpop.eup %2719  ;;  %2019 = vrot.lane.b32.xlu2 %v1953_v16, %s2854_s1 }
 0x837   :  { %v2722_v60 = vpop.eup %2721  ;;  %v1863_v28 = vadd.f32 1.0, %v2720_v42 }
 0x838   :  { %v1956_v46 = vmul.f32 %v2722_v60, %v1862_v1  ;;  %vm1961_vm5 = vweird.f32 %v2722_v60 }
 0x839   :  { %2723 = vrcp.f32 %v1863_v28  ;;  %vm1962_vm6 = vmor %vm1960_vm2, %vm1961_vm5  ;;  %v1981_v2 = vand.u32 2147483648, %v1863_v28  ;;  %v1979_v18 = vand.u32 2147483647, %v1863_v28  ;;  %vm1975_vm9 = vweird.f32 %v1863_v28 }
 0x83a   :  { %v1957_v39 = vsub.f32 1.0, %v1956_v46  ;;  %2725 = vtanh.f32 %v3586_v63 }
 0x83b   :  { %v1982_v15 = vor.u32 1.1754944e-38, %v1981_v2  ;;  %vm1980_vm10 = vcmp.eq.f32.partialorder %v1979_v18, 8.507059e+37  ;;  %2727 = vtanh.f32 %v3589_v6 }
 0x83c   :  { %v1958_v0 = vmul.f32 %v2722_v60, %v1957_v39 }
 0x83e   :  { %v1959_v47 = vadd.f32 %v2722_v60, %v1958_v0 }
 0x83f   :  { %v2724_v48 = vpop.eup %2723 }
 0x840   :  { %v1963_v12 = vsel %vm1962_vm6, %v2722_v60, %v1959_v47  ;;  %v1971_v9 = vmul.f32 %v2724_v48, %v1863_v28  ;;  %vm1976_vm8 = vweird.f32 %v2724_v48  ;;  %v2726_v52 = vpop.eup %2725 }
 0x841   :  { %v1968_v49 = vsel %vm1965_vm7, %v1967_v20, %v1963_v12  ;;  %vm1977_vm1 = vmor %vm1975_vm9, %vm1976_vm8  ;;  %v2728_v41 = vpop.eup %2727 }
 0x842   :  { %2021 = vrot.lane.b32.xlu0 %v1968_v49, %s2854_s1  ;;  %v1972_v24 = vsub.f32 1.0, %v1971_v9 }
 0x844   :  { %v1973_v58 = vmul.f32 %v2724_v48, %v1972_v24 }
 0x846   :  { %v1974_v29 = vadd.f32 %v2724_v48, %v1973_v58 }
 0x848   :  { %v1978_v40 = vsel %vm1977_vm1, %v2724_v48, %v1974_v29 }
 0x849   :  { %v1983_v25 = vsel %vm1980_vm10, %v1982_v15, %v1978_v40 }
 0x84a   :  { %2023 = vrot.lane.b32.xlu1 %v1983_v25, %s2854_s1 }
 0x864   :  { %v2012_v62 = vpop.permute.xlu2 %2011 }
 0x865   :  { %v2037_v54 = vmul.f32 %v2728_v41, %v2012_v62 }
 0x870   :  { %v1765_v23 = vpop.permute.xlu0 %1764 }
 0x871   :  { %v1783_v36 = vadd.f32 %v1765_v23, %v1738_v50 }
 0x874   :  { %v2010_v17 = vpop.permute.xlu1 %2009 }
 0x875   :  { %v2036_v53 = vmul.f32 %v2726_v52, %v2010_v17 }
 0x877   :  { %v2045_v38 = vpack.c.bf16 %v2037_v54, %v2036_v53 }
 0x878   :  { %v2014_v4 = vpop.permute.xlu2 %2013 }
 0x879   :  { %2473 = vmatmul.msk.bf16.vlgmr.msra.gmra.mxu1 %vm137_vm0, %v2045_v38 }
 0x87c   :  { %v1801_v11 = vpop.permute.xlu1 %1800 }
 0x87d   :  { %v1819_v45 = vadd.f32 %v1801_v11, %v1783_v36 }
 0x87f   :  { %v2466_v43 = vmul.f32 -1.442695, %v1819_v45 }
 0x881   :  { %2729 = vpow2.f32 %v2466_v43 }
 0x887   :  { %v2730_v55 = vpop.eup %2729 }
 0x888   :  { %v1864_v63 = vadd.f32 1.0, %v2730_v55 }
 0x88a   :  { %2731 = vrcp.f32 %v1864_v63  ;;  %v1996_v8 = vand.u32 2147483648, %v1864_v63  ;;  %v1994_v7 = vand.u32 2147483647, %v1864_v63  ;;  %vm1990_vm12 = vweird.f32 %v1864_v63 }
 0x88b   :  { %2733 = vtanh.f32 %v3594_v37 }
 0x88c   :  { %2735 = vtanh.f32 %v3598_v32  ;;  %v1997_v37 = vor.u32 1.1754944e-38, %v1996_v8  ;;  %vm1995_vm14 = vcmp.eq.f32.partialorder %v1994_v7, 8.507059e+37 }
 0x88d   :  { %2737 = vtanh.f32 %v3604_v57 }
 0x88e   :  { %2739 = vtanh.f32 %v3607_v33 }
 0x88f   :  { %2741 = vtanh.f32 %v3611_v3 }
 0x890   :  { %v2732_v6 = vpop.eup %2731  ;;  %v2020_v0 = vpop.permute.xlu2 %2019  ;;  %2743 = vtanh.f32 %v3618_v35 }
 0x891   :  { %v1986_v59 = vmul.f32 %v2732_v6, %v1864_v63  ;;  %v2734_v5 = vpop.eup %2733  ;;  %vm1991_vm11 = vweird.f32 %v2732_v6  ;;  %2745 = vtanh.f32 %v1819_v45 }
 0x892   :  { %v2736_v30 = vpop.eup %2735  ;;  %v2038_v42 = vmul.f32 %v2734_v5, %v2014_v4  ;;  %vm1992_vm13 = vmor %vm1990_vm12, %vm1991_vm11 }
 0x893   :  { %v1987_v1 = vsub.f32 1.0, %v1986_v59  ;;  %v2738_v56 = vpop.eup %2737  ;;  %v1191_v59 = vadd.f32 %v3397_v26, %v3236_v51 }
 0x894   :  { %v2740_v57 = vpop.eup %2739 }
 0x895   :  { %v1988_v14 = vmul.f32 %v2732_v6, %v1987_v1  ;;  %v2041_v47 = vmul.f32 %v2740_v57, %v2020_v0  ;;  %v2742_v12 = vpop.eup %2741  ;;  %v1657_v1 = vadd.f32 %v3544_v61, %v1191_v59 }
 0x896   :  { %v2016_v16 = vpop.permute.xlu0 %2015  ;;  %v2744_v9 = vpop.eup %2743 }
 0x897   :  { %v2039_v60 = vmul.f32 %v2736_v30, %v2016_v16  ;;  %v1989_v28 = vadd.f32 %v2732_v6, %v1988_v14  ;;  %v2746_v18 = vpop.eup %2745 }
 0x899   :  { %v2046_v32 = vpack.c.bf16 %v2039_v60, %v2038_v42  ;;  %v1993_v46 = vsel %vm1992_vm13, %v2732_v6, %v1989_v28 }
 0x89a   :  { %v1998_v39 = vsel %vm1995_vm14, %v1997_v37, %v1993_v46 }
 0x89b   :  { %2474 = vmatmul.msk.bf16.gmra.mxu1 %vm137_vm0, %v2046_v32  ;;  %2025 = vrot.lane.b32.xlu2 %v1998_v39, %s2854_s1  ;;  %v2529_v32 = vld [vmem:[#allocation6] ss:$0 sm:$0xff] }
 0x89e   :  { %v2018_v34 = vpop.permute.xlu1 %2017 }
 0x89f   :  { %v2040_v48 = vmul.f32 %v2738_v56, %v2018_v34 }
 0x8a1   :  { %v2047_v20 = vpack.c.bf16 %v2041_v47, %v2040_v48 }
 0x8ab   :  { %2475 = vmatmul.msk.bf16.gmra.mxu1 %vm137_vm0, %v2047_v20 }
 0x8b4   :  { %v2022_v33 = vpop.permute.xlu0 %2021 }
 0x8b5   :  { %v2042_v24 = vmul.f32 %v2742_v12, %v2022_v33 }
 0x8bc   :  { %v2024_v49 = vpop.permute.xlu1 %2023 }
 0x8bd   :  { %v2043_v2 = vmul.f32 %v2744_v9, %v2024_v49 }
 0x8bf   :  { %v2048_v58 = vpack.c.bf16 %v2043_v2, %v2042_v24 }
 0x8c1   :  { %2476 = vmatmul.msk.bf16.gmra.mxu1 %vm137_vm0, %v2048_v58 }
 0x8f5   :  { %v2026_v29 = vpop.permute.xlu2 %2025 }
 0x8f6   :  { %v2044_v15 = vmul.f32 %v2746_v18, %v2026_v29  ;;  %v2083_v40 = vpop.f32.mrf.mxu1 }
 0x8f7   :  { %v2107_v3 = vadd.f32 %v2083_v40, %v3508_v44 }
 0x8f8   :  { %v2049_v25 = vpack.c.bf16 %v2044_v15, %v2044_v15 }
 0x8f9   :  { %v2116_v52 = vmax.f32 %v2107_v3, 0.0 }
 0x8fa   :  { %2477 = vmatmul.msk.bf16.gmra.mxu1 %vm137_vm0, %v2049_v25 }
 0x8fe   :  { %v2085_v35 = vpop.f32.mrf.mxu1 }
 0x8ff   :  { %v2108_v62 = vadd.f32 %v2085_v35, %v3514_v31  ;;  %v2514_v31 = vld [vmem:[%s3682_s8] sm:$0xff] }
 0x900   :  { %2179 = vmatpush.bf16.msra.mxu2 %v2514_v31 }
 0x901   :  { %v2117_v41 = vmax.f32 %v2108_v62, 0.0 }
 0x903   :  { %v2125_v17 = vpack.c.bf16 %v2117_v41, %v2116_v52 }
 0x905   :  { %2141 = vrot.lane.b32.xlu0 %v2125_v17, %s2854_s1 }
 0x918   :  { %v2088_v54 = vpop.f32.mrf.mxu1 }
 0x919   :  { %v2109_v53 = vadd.f32 %v2088_v54, %v3520_v21 }
 0x91b   :  { %v2118_v50 = vmax.f32 %v2109_v53, 0.0 }
 0x920   :  { %v2090_v38 = vpop.f32.mrf.mxu1 }
 0x921   :  { %v2110_v23 = vadd.f32 %v2090_v38, %v3526_v13 }
 0x923   :  { %v2119_v36 = vmax.f32 %v2110_v23, 0.0 }
 0x925   :  { %v2126_v11 = vpack.c.bf16 %v2119_v36, %v2118_v50  ;;  %v2530_v36 = vld [vmem:[#allocation8] ss:$0 sm:$0xff] }
 0x927   :  { %2143 = vrot.lane.b32.xlu1 %v2126_v11, %s2854_s1 }
 0x928   :  { %v2093_v44 = vpop.f32.mrf.mxu1 }
 0x929   :  { %v2111_v45 = vadd.f32 %v2093_v44, %v3531_v10 }
 0x92b   :  { %v2120_v21 = vmax.f32 %v2111_v45, 0.0 }
 0x930   :  { %v2095_v43 = vpop.f32.mrf.mxu1 }
 0x931   :  { %v2112_v55 = vadd.f32 %v2095_v43, %v3537_v19 }
 0x933   :  { %v2121_v63 = vmax.f32 %v2112_v55, 0.0 }
 0x935   :  { %v2127_v6 = vpack.c.bf16 %v2121_v63, %v2120_v21 }
 0x937   :  { %2145 = vrot.lane.b32.xlu2 %v2127_v6, %s2854_s1 }
 0x93e   :  { %v2098_v13 = vpop.f32.mrf.mxu1 }
 0x93f   :  { %v2113_v4 = vadd.f32 %v2098_v13, %v3542_v22  ;;  %v2515_v22 = vld [vmem:[%s3684_s10] sm:$0xff]  ;;  %s2857_s10 = smov [#allocation9]  }
 0x940   :  { %2253 = vmatpush.bf16.msra.mxu3 %v2515_v22  ;;  %s2292_s14 = sshll.u32 %s2857_s10, 4  ;;  %s2293_s14 = int_to_ptr.vmem [resolvable:$true] %s2292_s14 }
 0x941   :  { %v2122_v10 = vmax.f32 %v2113_v4, 0.0 }
 0x946   :  { %v2100_v8 = vpop.f32.mrf.mxu1 }
 0x947   :  { %v2114_v5 = vadd.f32 %v2100_v8, %v1657_v1 }
 0x949   :  { %v2123_v14 = vmax.f32 %v2114_v5, 0.0 }
 0x94b   :  { %v2128_v7 = vpack.c.bf16 %v2123_v14, %v2122_v10 }
 0x94d   :  { %2147 = vrot.lane.b32.xlu0 %v2128_v7, %s2854_s1 }
 0x977   :  { %v2142_v19 = vpop.permute.xlu0 %2141  ;;  %v2103_v30 = vpop.f32.mrf.mxu1 }
 0x978   :  { %v2115_v16 = vadd.f32 %v2103_v30, %v3559_v27  ;;  %2482 = vmatmul.msk.bf16.vlgmr.msra.gmra.mxu2 %vm137_vm0, %v2142_v19 }
 0x97a   :  { %v2124_v42 = vmax.f32 %v2115_v16, 0.0 }
 0x97c   :  { %v2129_v60 = vpack.c.bf16 %v2124_v42, %v2124_v42 }
 0x97e   :  { %2149 = vrot.lane.b32.xlu1 %v2129_v60, %s2854_s1 }
 0x97f   :  { %v2105_v51 = vpop.f32.mrf.mxu1 }
 0x991   :  { %v2146_v61 = vpop.permute.xlu2 %2145 }
 0x999   :  { %v2144_v26 = vpop.permute.xlu1 %2143 }
 0x99a   :  { %2483 = vmatmul.msk.bf16.gmra.mxu2 %vm137_vm0, %v2144_v26 }
 0x9aa   :  { %2484 = vmatmul.msk.bf16.gmra.mxu2 %vm137_vm0, %v2146_v61 }
 0x9bf   :  { %v2148_v28 = vpop.permute.xlu0 %2147 }
 0x9c0   :  { %2485 = vmatmul.msk.bf16.gmra.mxu2 %vm137_vm0, %v2148_v28 }
 0x9f0   :  { %v2150_v27 = vpop.permute.xlu1 %2149 }
 0x9f1   :  { %2486 = vmatmul.msk.bf16.gmra.mxu2 %vm137_vm0, %v2150_v27 }
 0x9fb   :  { %v2181_v37 = vpop.f32.mrf.mxu2 }
 0x9fc   :  { %v2182_v46 = vadd.f32 %v2529_v32, %v2181_v37 }
 0x9fe   :  { %v2205_v0 = vmax.f32 %v2182_v46, 0.0 }
 0xa03   :  { %v2183_v39 = vpop.f32.mrf.mxu2 }
 0xa04   :  { %v2184_v56 = vadd.f32 %v2529_v32, %v2183_v39 }
 0xa06   :  { %v2206_v57 = vmax.f32 %v2184_v56, 0.0 }
 0xa08   :  { %v2214_v34 = vpack.c.bf16 %v2206_v57, %v2205_v0 }
 0xa0a   :  { %2491 = vmatmul.msk.bf16.vlgmr.msra.gmra.mxu3 %vm137_vm0, %v2214_v34 }
 0xa1d   :  { %v2186_v47 = vpop.f32.mrf.mxu2 }
 0xa1e   :  { %v2187_v48 = vadd.f32 %v2529_v32, %v2186_v47 }
 0xa20   :  { %v2207_v12 = vmax.f32 %v2187_v48, 0.0 }
 0xa25   :  { %v2188_v20 = vpop.f32.mrf.mxu2 }
 0xa26   :  { %v2189_v33 = vadd.f32 %v2529_v32, %v2188_v20 }
 0xa28   :  { %v2208_v9 = vmax.f32 %v2189_v33, 0.0 }
 0xa2a   :  { %v2215_v49 = vpack.c.bf16 %v2208_v9, %v2207_v12 }
 0xa2c   :  { %2492 = vmatmul.msk.bf16.gmra.mxu3 %vm137_vm0, %v2215_v49 }
 0xa2d   :  { %v2191_v24 = vpop.f32.mrf.mxu2 }
 0xa2e   :  { %v2192_v2 = vadd.f32 %v2529_v32, %v2191_v24 }
 0xa30   :  { %v2209_v29 = vmax.f32 %v2192_v2, 0.0 }
 0xa35   :  { %v2193_v58 = vpop.f32.mrf.mxu2 }
 0xa36   :  { %v2194_v18 = vadd.f32 %v2529_v32, %v2193_v58 }
 0xa38   :  { %v2210_v15 = vmax.f32 %v2194_v18, 0.0 }
 0xa3a   :  { %v2216_v40 = vpack.c.bf16 %v2210_v15, %v2209_v29 }
 0xa3c   :  { %2493 = vmatmul.msk.bf16.gmra.mxu3 %vm137_vm0, %v2216_v40 }
 0xa43   :  { %v2196_v25 = vpop.f32.mrf.mxu2 }
 0xa44   :  { %v2197_v3 = vadd.f32 %v2529_v32, %v2196_v25 }
 0xa46   :  { %v2211_v52 = vmax.f32 %v2197_v3, 0.0 }
 0xa4b   :  { %v2198_v35 = vpop.f32.mrf.mxu2 }
 0xa4c   :  { %v2199_v62 = vadd.f32 %v2529_v32, %v2198_v35 }
 0xa4e   :  { %v2212_v41 = vmax.f32 %v2199_v62, 0.0 }
 0xa50   :  { %v2217_v17 = vpack.c.bf16 %v2212_v41, %v2211_v52 }
 0xa52   :  { %2494 = vmatmul.msk.bf16.gmra.mxu3 %vm137_vm0, %v2217_v17 }
 0xa74   :  { %v2201_v54 = vpop.f32.mrf.mxu2 }
 0xa75   :  { %v2202_v53 = vadd.f32 %v2529_v32, %v2201_v54 }
 0xa77   :  { %v2213_v38 = vmax.f32 %v2202_v53, 0.0 }
 0xa79   :  { %v2218_v23 = vpack.c.bf16 %v2213_v38, %v2213_v38 }
 0xa7b   :  { %2495 = vmatmul.msk.bf16.gmra.mxu3 %vm137_vm0, %v2218_v23 }
 0xa7c   :  { %v2203_v50 = vpop.f32.mrf.mxu2 }
 0xa8d   :  { %v2255_v11 = vpop.f32.mrf.mxu3 }
 0xa8e   :  { %v2256_v44 = vadd.f32 %v2530_v36, %v2255_v11 }
 0xa90   :  { %2279 = vst [vmem:[#allocation9] sm:$0xff] %v2256_v44 }
 0xa95   :  { %v2257_v31 = vpop.f32.mrf.mxu3 }
 0xa96   :  { %v2258_v45 = vadd.f32 %v2530_v36, %v2257_v31 }
 0xa98   :  { %2280 = vst [vmem:[#allocation9 + $0x8] sm:$0xff] %v2258_v45 }
 0xaaf   :  { %v2260_v43 = vpop.f32.mrf.mxu3 }
 0xab0   :  { %v2261_v55 = vadd.f32 %v2530_v36, %v2260_v43 }
 0xab2   :  { %2281 = vst [vmem:[#allocation9 + $0x10] sm:$0xff] %v2261_v55 }
 0xab7   :  { %v2262_v21 = vpop.f32.mrf.mxu3 }
 0xab8   :  { %v2263_v63 = vadd.f32 %v2530_v36, %v2262_v21 }
 0xaba   :  { %2282 = vst [vmem:[#allocation9 + $0x18] sm:$0xff] %v2263_v63 }
 0xabf   :  { %v2265_v6 = vpop.f32.mrf.mxu3 }
 0xac0   :  { %v2266_v13 = vadd.f32 %v2530_v36, %v2265_v6 }
 0xac2   :  { %2283 = vst [vmem:[#allocation9 + $0x20] sm:$0xff] %v2266_v13 }
 0xac7   :  { %v2267_v59 = vpop.f32.mrf.mxu3 }
 0xac8   :  { %v2268_v1 = vadd.f32 %v2530_v36, %v2267_v59 }
 0xaca   :  { %2284 = vst [vmem:[#allocation9 + $0x28] sm:$0xff] %v2268_v1 }
 0xad5   :  { %v2270_v4 = vpop.f32.mrf.mxu3 }
 0xad6   :  { %v2271_v8 = vadd.f32 %v2530_v36, %v2270_v4 }
 0xad8   :  { %2285 = vst [vmem:[#allocation9 + $0x30] sm:$0xff] %v2271_v8 }
 0xadd   :  { %v2272_v5 = vpop.f32.mrf.mxu3 }
 0xade   :  { %v2273_v10 = vadd.f32 %v2530_v36, %v2272_v5 }
 0xae0   :  { %2286 = vst [vmem:[#allocation9 + $0x38] sm:$0xff] %v2273_v10 }
 0xafe   :  { %v2275_v14 = vpop.f32.mrf.mxu3 }
 0xaff   :  { %v2276_v7 = vadd.f32 %v2530_v36, %v2275_v14 }
 0xb01   :  { %2287 = vst [vmem:[#allocation9 + $0x40] sm:$0xff] %v2276_v7 }
 0xb02   :  { %2300 = dma.vmem_to_hbm [thread:$0]  %s2293_s14, 1152, %s2295_s16, [#allocation5], %s2858_s6, %s2858_s6, %s2859_s17  }
 0xb06   :  { %v2277_v19 = vpop.f32.mrf.mxu3 }
 0xb07   :  { %2847 = dma.done.wait [#allocation5], 1152  }
 0xb08   :  { %2848 = vsyncadd [#allocation5], 4294966144 }
 0xb09   :  { %2305 = vsyncpa [#allocation4], 1 }
 0xb0a   :  { %2306 = vsyncpa [#allocation7], 1 }
 0xb0b   :  { %2307 = vsyncpa [#allocation5], 1 }

</bundles_post_ra>
